<compile_context>
chip_gen: v6e
topology: v6e:2x2x1
jax: 0.10.0
libtpu: 0.0.40
codegen_flags: <defaults>
</compile_context>

<pallas_src>
import functools

import jax
import jax.numpy as jnp
from jax.experimental import pallas as pl
from jax.experimental.pallas import tpu as pltpu


def rbf_kernel(x_ref, scale2_ref, ct2_ref, cnorm_ref, wt_ref, o_ref, *, fc_dtype):
    # x_ref:      (TB, D)     batch tile of raw inputs
    # scale2_ref: (1, D)      exp(2*lam), precomputed (grid-invariant)
    # ct2_ref:    (D, C)      exp(2*lam)-scaled centers, transposed (resident, f32)
    # cnorm_ref:  (1, C)      sum_d exp(2*lam_d) * c_d^2 (resident, f32)
    # wt_ref:     (C, O_pad)  fc weight, transposed + lane-padded, already in fc_dtype
    # o_ref:      (TB, O_pad) output tile
    x = x_ref[...].astype(jnp.float32)                                       # (TB, D)

    # sum_d exp(2*lam_d) * x_d^2
    x_norm = jnp.sum(x * x * scale2_ref[...], axis=-1, keepdims=True)        # (TB, 1)

    # Cross term on the MXU: (TB, D) @ (D, C) where ct2 already carries exp(2*lam).
    # Keep this one in full f32 precision: it feeds the cancellation-prone expansion.
    cross = jnp.dot(x, ct2_ref[...],
                    preferred_element_type=jnp.float32,
                    precision=jax.lax.Precision.HIGHEST)                     # (TB, C)

    # ||(x - c) * exp(lam)||^2 = x_norm + cnorm - 2*cross ; clamp against cancellation.
    norm = jnp.maximum(x_norm + cnorm_ref[...] - 2.0 * cross, 0.0)           # (TB, C)
    h = jnp.exp(-norm)                                                       # (TB, C)

    # fc projection on the MXU: (TB, C) @ (C, O_pad). wt is pre-cast in the wrapper;
    # only the activation h is cast here (it is produced fresh every step anyway).
    out = jnp.dot(h.astype(fc_dtype), wt_ref[...],
                  preferred_element_type=jnp.float32)                        # (TB, O_pad)
    o_ref[...] = out.astype(o_ref.dtype)


def _tensorcores_per_chip():
    """2 on v7x (megacore shards 'parallel' grid axes), 1 on v5e/v6e; safe fallback 1."""
    try:
        kind = jax.devices()[0].device_kind.lower()
    except Exception:
        return 1
    return 2 if ("v7" in kind or "7x" in kind) else 1


def _pick_batch_tile(batch):
    """One grid step per TensorCore.

    At these shapes the ~0.35us per-grid-step overhead dominates the compute, so
    fewer, taller MXU tiles win: 1 step on single-TC chips (v5e/v6e), 2 parallel
    steps on v7x so each TC gets one tile. Falls back to a single step if the
    split would break sublane (multiple-of-8) alignment.
    """
    steps = _tensorcores_per_chip()
    if steps > 1 and batch % steps == 0 and (batch // steps) % 8 == 0:
        return batch // steps
    return batch


@functools.partial(jax.jit, static_argnames=("batch_tile", "mxu_dtype"))
def rbf_forward(x, centers, lam, weight, *, batch_tile=None, mxu_dtype=jnp.float32):
    """Pallas RBF forward. x:(B,D), centers:(C,D), lam:(1,D), weight:(O,C) -> (B,O)."""
    B, D = x.shape
    C, _ = centers.shape
    O, _ = weight.shape
    tb = _pick_batch_tile(B) if batch_tile is None else batch_tile
    assert B % tb == 0, "batch must be divisible by the batch tile"

    # ---- Grid-invariant preprocessing (hoisted; fused by jit around the kernel) ----
    scale2 = jnp.exp(2.0 * lam.astype(jnp.float32))                   # (1, D) = exp(lam)^2
    c2 = centers.astype(jnp.float32) * scale2                         # (C, D) exp(2*lam)*c
    ct2 = c2.T                                                        # (D, C) — no in-kernel .T
    cnorm = jnp.sum(centers.astype(jnp.float32) * c2, axis=1)[None, :]  # (1, C) = Σ exp(2λ)c²

    # fc weight: pre-transpose to (C, O), pad O to a lane-dense multiple of 128,
    # and cast ONCE to the fc matmul dtype (grid-invariant — never cast in-kernel).
    o_pad = max(128, ((O + 127) // 128) * 128)
    wt = weight.astype(jnp.float32).T                                 # (C, O)
    if o_pad != O:
        wt = jnp.pad(wt, ((0, 0), (0, o_pad - O)))                    # (C, O_pad)
    wt = wt.astype(mxu_dtype)

    kernel = functools.partial(rbf_kernel, fc_dtype=mxu_dtype)
    out_padded = pl.pallas_call(
        kernel,
        out_shape=jax.ShapeDtypeStruct((B, o_pad), x.dtype),
        grid_spec=pltpu.PrefetchScalarGridSpec(
            num_scalar_prefetch=0,
            grid=(B // tb,),                                   # 1 step (v5e/v6e), 2 (v7x)
            in_specs=[
                pl.BlockSpec((tb, D), lambda i: (i, 0)),       # x tile over batch
                pl.BlockSpec((1, D), lambda i: (0, 0)),        # exp(2*lam)   (resident)
                pl.BlockSpec((D, C), lambda i: (0, 0)),        # scaled c'.T  (resident)
                pl.BlockSpec((1, C), lambda i: (0, 0)),        # center norms (resident)
                pl.BlockSpec((C, o_pad), lambda i: (0, 0)),    # W.T padded   (resident)
            ],
            out_specs=pl.BlockSpec((tb, o_pad), lambda i: (i, 0)),
        ),
        compiler_params=pltpu.CompilerParams(
            dimension_semantics=("parallel",)),                # megacore shards on v7x
    )(x, scale2, ct2, cnorm, wt)
    return out_padded[:, :O]


def rbf_reference(x, centers, lam, weight):
    """Plain-JAX reference mirroring the PyTorch forward exactly."""
    diff = x[:, None, :] - centers[None, :, :]
    diff = diff * jnp.exp(lam)[None, :, :]
    norm = jnp.sum(diff * diff, axis=-1)
    h = jnp.exp(-norm)
    return h @ weight.T


if __name__ == "__main__":
    # Small, deterministic config consistent with the module's __init__ shapes.
    batch_size = 256    # B
    input_size = 32     # D
    num_centers = 128   # C
    output_size = 16    # O
    center_mu = 0.0
    center_std = 1.0

    key = jax.random.PRNGKey(0)
    kx, kc, kw = jax.random.split(key, 3)

    # Module __init__ semantics:
    #   centers = center_mu + randn(C, D) * center_std
    #   lam     = log(ones(1, D)) = zeros
    #   fc      = BatchedLinear(C, O, B, bias=False) -> shared weight (O, C)
    centers = center_mu + jax.random.normal(
        kc, (num_centers, input_size), dtype=jnp.float32) * center_std
    lam = jnp.zeros((1, input_size), dtype=jnp.float32)
    weight = jax.random.normal(
        kw, (output_size, num_centers), dtype=jnp.float32) * 0.05
    x = jax.random.normal(kx, (batch_size, input_size), dtype=jnp.float32)

    out = rbf_forward(x, centers, lam, weight)
    out = jax.block_until_ready(out)

    ref = rbf_reference(x, centers, lam, weight)
    assert out.shape == (batch_size, output_size)
    assert jnp.allclose(out, ref, atol=1e-4, rtol=1e-3), "mismatch vs reference"

    print("KERNEL_OK")
</pallas_src>

<mosaic_0001>
module attributes {stable_mosaic.version = 11 : i64} {
  func.func @rbf_kernel(%arg0: i32, %arg1: memref<256x32xf32, #tpu.memory_space<vmem>>, %arg2: memref<1x32xf32, #tpu.memory_space<vmem>>, %arg3: memref<32x128xf32, #tpu.memory_space<vmem>>, %arg4: memref<1x128xf32, #tpu.memory_space<vmem>>, %arg5: memref<128x128xf32, #tpu.memory_space<vmem>>, %arg6: memref<256x128xf32, #tpu.memory_space<vmem>>) attributes {dimension_semantics = [#tpu.dimension_semantics<parallel>], iteration_bounds = array<i64: 1>, scalar_prefetch = 0 : i64, scratch_operands = 0 : i64, tpu.core_type = #tpu.core_type<tc>, window_params = [{transform_indices = @transform_0, window_bounds = array<i64: 256, 32>}, {pipeline_mode = #tpu.pipeline_mode<synchronous>, transform_indices = @transform_1, window_bounds = array<i64: 1, 32>}, {pipeline_mode = #tpu.pipeline_mode<synchronous>, transform_indices = @transform_2, window_bounds = array<i64: 32, 128>}, {pipeline_mode = #tpu.pipeline_mode<synchronous>, transform_indices = @transform_3, window_bounds = array<i64: 1, 128>}, {pipeline_mode = #tpu.pipeline_mode<synchronous>, transform_indices = @transform_4, window_bounds = array<i64: 128, 128>}, {transform_indices = @transform_5, window_bounds = array<i64: 256, 128>}]} {
    %c0 = arith.constant 0 : index
    %c0_0 = arith.constant 0 : index
    %0 = vector.load %arg1[%c0, %c0_0] : memref<256x32xf32, #tpu.memory_space<vmem>>, vector<256x32xf32>
    %1 = arith.mulf %0, %0 : vector<256x32xf32>
    %c0_1 = arith.constant 0 : index
    %c0_2 = arith.constant 0 : index
    %2 = vector.load %arg2[%c0_1, %c0_2] : memref<1x32xf32, #tpu.memory_space<vmem>>, vector<1x32xf32>
    %3 = vector.broadcast %2 : vector<1x32xf32> to vector<256x32xf32>
    %4 = arith.mulf %1, %3 : vector<256x32xf32>
    %cst = arith.constant dense<0.000000e+00> : vector<256xf32>
    %5 = vector.multi_reduction <add>, %4, %cst [1] : vector<256x32xf32> to vector<256xf32>
    %6 = vector.shape_cast %5 : vector<256xf32> to vector<256x1xf32>
    %c0_3 = arith.constant 0 : index
    %c0_4 = arith.constant 0 : index
    %7 = vector.load %arg3[%c0_3, %c0_4] : memref<32x128xf32, #tpu.memory_space<vmem>>, vector<32x128xf32>
    %cst_5 = arith.constant dense<0.000000e+00> : vector<256x128xf32>
    %8 = tpu.matmul %0, %7, %cst_5 {dimension_numbers = #tpu.dot_dimension_numbers<[1], [0], [0], [1], [0, 0, 1, 1], [], []>, precision = #tpu.contract_precision<fp32>} : vector<256x32xf32>, vector<32x128xf32>, vector<256x128xf32> -> vector<256x128xf32>
    %c0_6 = arith.constant 0 : index
    %c0_7 = arith.constant 0 : index
    %9 = vector.load %arg4[%c0_6, %c0_7] : memref<1x128xf32, #tpu.memory_space<vmem>>, vector<1x128xf32>
    %10 = vector.broadcast %6 : vector<256x1xf32> to vector<256x128xf32>
    %11 = vector.broadcast %9 : vector<1x128xf32> to vector<256x128xf32>
    %12 = arith.addf %10, %11 : vector<256x128xf32>
    %cst_8 = arith.constant 2.000000e+00 : f32
    %13 = vector.broadcast %cst_8 : f32 to vector<256x128xf32>
    %14 = arith.mulf %13, %8 : vector<256x128xf32>
    %15 = arith.subf %12, %14 : vector<256x128xf32>
    %cst_9 = arith.constant 0.000000e+00 : f32
    %16 = vector.broadcast %cst_9 : f32 to vector<256x128xf32>
    %17 = arith.maximumf %15, %16 : vector<256x128xf32>
    %cst_10 = arith.constant 0.000000e+00 : f32
    %18 = vector.broadcast %cst_10 : f32 to vector<256x128xf32>
    %19 = arith.subf %18, %17 : vector<256x128xf32>
    %20 = math.exp %19 : vector<256x128xf32>
    %c0_11 = arith.constant 0 : index
    %c0_12 = arith.constant 0 : index
    %21 = vector.load %arg5[%c0_11, %c0_12] : memref<128x128xf32, #tpu.memory_space<vmem>>, vector<128x128xf32>
    %cst_13 = arith.constant dense<0.000000e+00> : vector<256x128xf32>
    %22 = tpu.matmul %20, %21, %cst_13 {dimension_numbers = #tpu.dot_dimension_numbers<[1], [0], [0], [1], [0, 0, 1, 1], [], []>} : vector<256x128xf32>, vector<128x128xf32>, vector<256x128xf32> -> vector<256x128xf32>
    %c0_14 = arith.constant 0 : index
    %c0_15 = arith.constant 0 : index
    %23 = vector.load %arg6[%c0_14, %c0_15] : memref<256x128xf32, #tpu.memory_space<vmem>>, vector<256x128xf32>
    tpu.vector_store %arg6[%c0_14, %c0_15], %22 {strides = array<i32>} : memref<256x128xf32, #tpu.memory_space<vmem>>, vector<256x128xf32>,
    return
  }
  func.func @transform_0(%arg0: i32) -> (i32, i32) {
    %c0_i32 = arith.constant 0 : i32
    %c0_i32_0 = arith.constant 0 : i32
    return %arg0, %c0_i32 : i32, i32
  }
  func.func @transform_1(%arg0: i32) -> (i32, i32) {
    %c0_i32 = arith.constant 0 : i32
    %c0_i32_0 = arith.constant 0 : i32
    %c0_i32_1 = arith.constant 0 : i32
    return %c0_i32, %c0_i32_0 : i32, i32
  }
  func.func @transform_2(%arg0: i32) -> (i32, i32) {
    %c0_i32 = arith.constant 0 : i32
    %c0_i32_0 = arith.constant 0 : i32
    %c0_i32_1 = arith.constant 0 : i32
    return %c0_i32, %c0_i32_0 : i32, i32
  }
  func.func @transform_3(%arg0: i32) -> (i32, i32) {
    %c0_i32 = arith.constant 0 : i32
    %c0_i32_0 = arith.constant 0 : i32
    %c0_i32_1 = arith.constant 0 : i32
    return %c0_i32, %c0_i32_0 : i32, i32
  }
  func.func @transform_4(%arg0: i32) -> (i32, i32) {
    %c0_i32 = arith.constant 0 : i32
    %c0_i32_0 = arith.constant 0 : i32
    %c0_i32_1 = arith.constant 0 : i32
    return %c0_i32, %c0_i32_0 : i32, i32
  }
  func.func @transform_5(%arg0: i32) -> (i32, i32) {
    %c0_i32 = arith.constant 0 : i32
    %c0_i32_0 = arith.constant 0 : i32
    return %arg0, %c0_i32 : i32, i32
  }
}

</mosaic_0001>

<bundles_post_ra>
// kernel: rbf_forward.1
= control target key start
LH: loop header
LB: loop body
LE: loop exit
PB: predicated region body
PF: predicated region fallthrough
CT: control target
= control target key end

     0   :  { %vm123_vm0 = vcmask 261120   ;;  %s5217_s2 = inlined_call_operand.vmem [shape: f32[32,128], index: 2, kind: input, shape index: {}]   ;;  %s5218_s0 = inlined_call_operand.vmem [shape: f32[256,32], index: 0, kind: input, shape index: {}]   ;;  %s5219_s1 = inlined_call_operand.vmem [shape: f32[1,32], index: 1, kind: input, shape index: {}]   ;;  %s5220_s4 = inlined_call_operand.vmem [shape: f32[128,128], index: 4, kind: input, shape index: {}]   ;;  %s5221_s3 = inlined_call_operand.vmem [shape: f32[1,128], index: 3, kind: input, shape index: {}]   ;;  %s5222_s5 = inlined_call_operand.vmem [shape: f32[256,128], index: 5, kind: output, shape index: {}]  }
   0x1   :  { %v223_v0 = vld [vmem:[%s5217_s2 + $0x18] sm:$0xff]  ;;  %v3436_v1 = vld [vmem:[%s5217_s2 + $0x10] sm:$0xff]  ;;  %v3441_v2 = vld [vmem:[%s5217_s2 + $0x8] sm:$0xff] }
   0x2   :  { %v3443_v3 = vand.u32 4294901760, %v223_v0  ;;  %v3446_v4 = vand.u32 4294901760, %v3436_v1  ;;  %v3449_v5 = vand.u32 4294901760, %v3441_v2  ;;  %v3454_v6 = vld [vmem:[%s5217_s2] sm:$0xff]  ;;  %v3464_v8 = vld [vmem:[%s5218_s0 + $0x88] sm:$0xff]  ;;  %v3486_v14 = vld [vmem:[%s5218_s0 + $0x90] sm:$0xff] }
   0x3   :  { %v3459_v7 = vld [vmem:[%s5218_s0 + $0x80] sm:$0xff]  ;;  %5323 = vst [vmem:[#allocation3_spill] sm:$0xff] %v3464_v8  ;;  %v3467_v9 = vand.u32 4294901760, %v3454_v6  ;;  %v276_v11 = vsel %vm123_vm0, %v3464_v8, 0  ;;  %v3481_v13 = vld [vmem:[%s5218_s0 + $0x8] sm:$0xff]  ;;  %5326 = vst [vmem:[#allocation6_spill] sm:$0xff] %v3486_v14 }
   0x4   :  { %5322 = vst [vmem:[#allocation2_spill] sm:$0xff] %v3459_v7  ;;  %v273_v10 = vsel %vm123_vm0, %v3459_v7, 0  ;;  %v3476_v12 = vld [vmem:[%s5218_s0] sm:$0xff]  ;;  %5325 = vst [vmem:[#allocation5_spill] sm:$0xff] %v3481_v13  ;;  %3328 = vmatprep.subr.mxu1 %v3443_v3  ;;  %2912 = vmatprep.subr.mxu0 %v3443_v3  ;;  %v3493_v16 = vsub.f32 %v223_v0, %v3443_v3  ;;  %v3495_v17 = vand.u32 4294901760, %v276_v11  ;;  %v3502_v19 = vld [vmem:[%s5218_s0 + $0x98] sm:$0xff] }
   0x5   :  { %5324 = vst [vmem:[#allocation4_spill] sm:$0xff] %v3476_v12  ;;  %v3490_v15 = vand.u32 4294901760, %v273_v10  ;;  %v225_v18 = vsel %vm123_vm0, %v3476_v12, 0  ;;  %5327 = vst [vmem:[#allocation7_spill] sm:$0xff] %v3502_v19  ;;  %v3507_v20 = vld [vmem:[%s5218_s0 + $0x10] sm:$0xff]  ;;  %3332 = vmatpush3.msra.mxu1 %v3443_v3  ;;  %2913 = vmatpush3.msra.mxu0 %v3443_v3  ;;  %v228_v22 = vsel %vm123_vm0, %v3481_v13, 0  ;;  %v742_v0 = vsub.f32 %v3436_v1, %v3446_v4 }
   0x6   :  { %5328 = vst [vmem:[#allocation8_spill] sm:$0xff] %v3507_v20  ;;  %v3511_v21 = vand.u32 4294901760, %v225_v18  ;;  %v279_v23 = vsel %vm123_vm0, %v3486_v14, 0  ;;  %v282_v24 = vsel %vm123_vm0, %v3502_v19, 0  ;;  %3329 = vmatprep.subr.mxu1 %v3446_v4  ;;  %2914 = vmatprep.subr.mxu0 %v3446_v4  ;;  %v3525_v26 = vand.u32 4294901760, %v3493_v16  ;;  %v3566_v41 = vld [vmem:[%s5218_s0 + $0x18] sm:$0xff] }
   0x7   :  { %v3522_v25 = vsub.f32 %v273_v10, %v3490_v15  ;;  %v3528_v27 = vsub.f32 %v276_v11, %v3495_v17  ;;  %v3530_v28 = vand.u32 4294901760, %v228_v22  ;;  %3333 = vmatpush3.msra.mxu1 %v3446_v4  ;;  %2915 = vmatpush3.msra.mxu0 %v3446_v4  ;;  %v3537_v30 = vand.u32 4294901760, %v279_v23  ;;  %5329 = vst [vmem:[#allocation9_spill] sm:$0xff] %v3566_v41  ;;  %v3590_v50 = vld [vmem:[%s5218_s0 + $0xa0] sm:$0xff]  ;;  %v3608_v59 = vld [vmem:[%s5218_s0 + $0xa8] sm:$0xff] }
   0x8   :  { %v3535_v29 = vsub.f32 %v225_v18, %v3511_v21  ;;  %v3539_v31 = vand.u32 4294901760, %v282_v24  ;;  %v231_v32 = vsel %vm123_vm0, %v3507_v20, 0  ;;  %3330 = vmatprep.subr.mxu1 %v3449_v5  ;;  %2916 = vmatprep.subr.mxu0 %v3449_v5  ;;  %v737_v34 = vsub.f32 %v3493_v16, %v3525_v26  ;;  %5330 = vst [vmem:[#allocation10_spill] sm:$0xff] %v3590_v50  ;;  %v3613_v60 = vld [vmem:[%s5218_s0 + $0x20] sm:$0xff] }
   0x9   :  { %v5226_v33 = vand.u32 4294901760, %v3522_v25  ;;  %v5225_v35 = vand.u32 4294901760, %v3528_v27  ;;  %v3550_v36 = vsub.f32 %v228_v22, %v3530_v28  ;;  %3334 = vmatpush3.msra.mxu1 %v3449_v5  ;;  %2917 = vmatpush3.msra.mxu0 %v3449_v5  ;;  %v3556_v38 = vsub.f32 %v279_v23, %v3537_v30  ;;  %5331 = vst [vmem:[#allocation11_spill] sm:$0xff] %v3608_v59  ;;  %v3629_v23 = vld [vmem:[%s5218_s0 + $0x28] sm:$0xff] }
   0xa   :  { %v5231_v37 = vand.u32 4294901760, %v3535_v29  ;;  %v3559_v39 = vsub.f32 %v282_v24, %v3539_v31  ;;  %v3561_v40 = vand.u32 4294901760, %v231_v32  ;;  %3331 = vmatprep.subr.mxu1 %v3467_v9  ;;  %v738_v43 = vand.u32 4294901760, %v737_v34  ;;  %2918 = vmatprep.subr.mxu0 %v3467_v9  ;;  %5332 = vst [vmem:[#allocation12_spill] sm:$0xff] %v3613_v60  ;;  %5333 = vst [vmem:[#allocation13_spill] sm:$0xff] %v3629_v23  ;;  %v3634_v24 = vld [vmem:[%s5218_s0 + $0xb0] sm:$0xff] }
   0xb   :  { %v552_v42 = vsub.f32 %v3522_v25, %v5226_v33  ;;  %v562_v44 = vsub.f32 %v3528_v27, %v5225_v35  ;;  %v5230_v45 = vand.u32 4294901760, %v3550_v36  ;;  %3335 = vmatpush3.msra.mxu1 %v3467_v9  ;;  %2919 = vmatpush3.msra.mxu0 %v3467_v9  ;;  %v5224_v47 = vand.u32 4294901760, %v3556_v38  ;;  %5334 = vst [vmem:[#allocation14_spill] sm:$0xff] %v3634_v24 }
   0xc   :  { %v392_v46 = vsub.f32 %v3535_v29, %v5231_v37  ;;  %v5223_v48 = vand.u32 4294901760, %v3559_v39  ;;  %v3585_v49 = vsub.f32 %v231_v32, %v3561_v40  ;;  %2968 = vmatprep.subr.mxu1 %v738_v43  ;;  %v234_v54 = vsel %vm123_vm0, %v3566_v41, 0  ;;  %3024 = vmatprep.subr.mxu0 %v3493_v16 }
   0xd   :  { %v553_v51 = vand.u32 4294901760, %v552_v42  ;;  %v563_v52 = vand.u32 4294901760, %v562_v44  ;;  %v402_v53 = vsub.f32 %v3550_v36, %v5230_v45  ;;  %v572_v56 = vsub.f32 %v3556_v38, %v5224_v47 }
   0xe   :  { %v393_v55 = vand.u32 4294901760, %v392_v46  ;;  %v582_v57 = vsub.f32 %v3559_v39, %v5223_v48  ;;  %v5229_v58 = vand.u32 4294901760, %v3585_v49  ;;  %v3615_v62 = vand.u32 4294901760, %v234_v54 }
   0xf   :  { %2944 = vmatprep.mubr.f32.mxu1 %v553_v51  ;;  %v403_v61 = vand.u32 4294901760, %v402_v53  ;;  %v285_v63 = vsel %vm123_vm0, %v3590_v50, 0  ;;  %v573_v10 = vand.u32 4294901760, %v572_v56  ;;  %v3639_v32 = vand.u32 4294901760, %v742_v0 }
  0x10   :  { %2945 = vmatmul.mubr.f32.vlgmr.msra.gmra.mxu1 %v563_v52  ;;  %2920 = vmatprep.mubr.f32.mxu0 %v393_v55  ;;  %v583_v11 = vand.u32 4294901760, %v582_v57  ;;  %v412_v18 = vsub.f32 %v3585_v49, %v5229_v58  ;;  %v3624_v22 = vand.u32 4294901760, %v285_v63  ;;  %v3637_v1 = vsub.f32 %v234_v54, %v3615_v62  ;;  %v3655_v52 = vld [vmem:[%s5218_s0 + $0xb8] sm:$0xff] }
  0x11   :  { %2969 = vmatpush3.msra.mxu1 %v738_v43  ;;  %2921 = vmatmul.mubr.f32.vlgmr.msra.gmra.mxu0 %v403_v61  ;;  %v288_v34 = vsel %vm123_vm0, %v3608_v59, 0  ;;  %v237_v42 = vsel %vm123_vm0, %v3613_v60, 0  ;;  %5337 = vst [vmem:[#allocation17_spill] sm:$0xff] %v3655_v52  ;;  %v744_v54 = vsub.f32 %v742_v0, %v3639_v32  ;;  %v240_v55 = vsel %vm123_vm0, %v3629_v23, 0 }
  0x12   :  { %2947 = vmatprep.mubr.f32.mxu1 %v573_v10  ;;  %v413_v44 = vand.u32 4294901760, %v412_v18  ;;  %v3646_v46 = vsub.f32 %v285_v63, %v3624_v22  ;;  %v3648_v51 = vand.u32 4294901760, %v288_v34  ;;  %v3650_v43 = vand.u32 4294901760, %v237_v42  ;;  %3025 = vmatpush3.msra.mxu0 %v3493_v16  ;;  %v3676_v10 = vld [vmem:[%s5218_s0 + $0x30] sm:$0xff] }
  0x13   :  { %v5227_v53 = vand.u32 4294901760, %v3637_v1  ;;  %v291_v56 = vsel %vm123_vm0, %v3634_v24, 0  ;;  %3026 = vmatprep.subr.mxu0 %v742_v0  ;;  %v3671_v63 = vand.u32 4294901760, %v240_v55  ;;  %5339 = vst [vmem:[#allocation19_spill] sm:$0xff] %v3676_v10  ;;  %v745_v18 = vand.u32 4294901760, %v744_v54  ;;  %v3696_v54 = vld [vmem:[%s5218_s0 + $0x38] sm:$0xff] }
  0x14   :  { %5335 = vst [vmem:[#allocation15_spill] sm:$0xff] %v3646_v46  ;;  %5336 = vst [vmem:[#allocation16_spill] sm:$0xff] %v3648_v51  ;;  %2948 = vmatmul.mubr.f32.gmra.mxu1 %v583_v11  ;;  %2923 = vmatprep.mubr.f32.mxu0 %v413_v44  ;;  %v5228_v57 = vand.u32 4294901760, %v3646_v46  ;;  %v3666_v61 = vsub.f32 %v288_v34, %v3648_v51  ;;  %v3669_v16 = vsub.f32 %v237_v42, %v3650_v43 }
  0x15   :  { %v422_v11 = vsub.f32 %v3637_v1, %v5227_v53  ;;  %v3681_v44 = vand.u32 4294901760, %v291_v56  ;;  %v294_v34 = vsel %vm123_vm0, %v3655_v52, 0  ;;  %3027 = vmatpush3.msra.mxu0 %v742_v0  ;;  %v3691_v35 = vsub.f32 %v240_v55, %v3671_v63  ;;  %5341 = vst [vmem:[#allocation21_spill] sm:$0xff] %v3696_v54  ;;  %2970 = vmatprep.subr.mxu1 %v745_v18 }
  0x16   :  { %5338 = vst [vmem:[#allocation18_spill] sm:$0xff] %v3666_v61  ;;  %v592_v42 = vsub.f32 %v3646_v46, %v5228_v57  ;;  %v5233_v48 = vand.u32 4294901760, %v3666_v61  ;;  %v5234_v47 = vand.u32 4294901760, %v3669_v16  ;;  %v3701_v53 = vand.u32 4294901760, %v294_v34  ;;  %2971 = vmatpush3.msra.mxu1 %v745_v18 }
  0x17   :  { %5340 = vst [vmem:[#allocation20_spill] sm:$0xff] %v3681_v44  ;;  %v423_v33 = vand.u32 4294901760, %v422_v11  ;;  %v3699_v0 = vsub.f32 %v291_v56, %v3681_v44  ;;  %v243_v57 = vsel %vm123_vm0, %v3676_v10, 0  ;;  %v5238_v11 = vand.u32 4294901760, %v3691_v35  ;;  %v3715_v56 = vld [vmem:[%s5218_s0 + $0xc0] sm:$0xff] }
  0x18   :  { %5343 = vst [vmem:[#allocation23_spill] sm:$0xff] %v3701_v53  ;;  %v593_v58 = vand.u32 4294901760, %v592_v42  ;;  %v602_v55 = vsub.f32 %v3666_v61, %v5233_v48  ;;  %v432_v45 = vsub.f32 %v3669_v16, %v5234_v47  ;;  %5344 = vst [vmem:[#allocation24_spill] sm:$0xff] %v3715_v56  ;;  %v3719_v42 = vsub.f32 %v294_v34, %v3701_v53 }
  0x19   :  { %5342 = vst [vmem:[#allocation22_spill] sm:$0xff] %v3699_v0  ;;  %2924 = vmatmul.mubr.f32.gmra.mxu0 %v423_v33  ;;  %v5241_v37 = vand.u32 4294901760, %v3699_v0  ;;  %v3721_v24 = vand.u32 4294901760, %v243_v57  ;;  %v246_v18 = vsel %vm123_vm0, %v3696_v54, 0  ;;  %v442_v52 = vsub.f32 %v3691_v35, %v5238_v11  ;;  %v3733_v33 = vld [vmem:[%s5218_s0 + $0xc8] sm:$0xff] }
  0x1a   :  { %5345 = vst [vmem:[#allocation25_spill] sm:$0xff] %v3719_v42  ;;  %2950 = vmatprep.mubr.f32.mxu1 %v593_v58  ;;  %v603_v48 = vand.u32 4294901760, %v602_v55  ;;  %v433_v47 = vand.u32 4294901760, %v432_v45  ;;  %v3728_v50 = vand.u32 4294901760, %v246_v18  ;;  %5346 = vst [vmem:[#allocation26_spill] sm:$0xff] %v3733_v33  ;;  %v5245_v59 = vand.u32 4294901760, %v3719_v42 }
  0x1b   :  { %v612_v34 = vsub.f32 %v3699_v0, %v5241_v37  ;;  %v3740_v58 = vsub.f32 %v243_v57, %v3721_v24  ;;  %v297_v45 = vsel %vm123_vm0, %v3715_v56, 0  ;;  %v443_v55 = vand.u32 4294901760, %v442_v52  ;;  %v3754_v37 = vld [vmem:[%s5218_s0 + $0x40] sm:$0xff]  ;;  %v3759_v57 = vld [vmem:[%s5218_s0 + $0x48] sm:$0xff] }
  0x1c   :  { %2951 = vmatmul.mubr.f32.gmra.mxu1 %v603_v48  ;;  %2926 = vmatprep.mubr.f32.mxu0 %v433_v47  ;;  %v3745_v11 = vsub.f32 %v246_v18, %v3728_v50  ;;  %v3747_v14 = vand.u32 4294901760, %v297_v45  ;;  %v749_v19 = vsub.f32 %v3441_v2, %v3449_v5  ;;  %5348 = vst [vmem:[#allocation28_spill] sm:$0xff] %v3754_v37  ;;  %5349 = vst [vmem:[#allocation29_spill] sm:$0xff] %v3759_v57 }
  0x1d   :  { %v613_v47 = vand.u32 4294901760, %v612_v34  ;;  %v622_v48 = vsub.f32 %v3719_v42, %v5245_v59  ;;  %v5249_v52 = vand.u32 4294901760, %v3740_v58  ;;  %v300_v2 = vsel %vm123_vm0, %v3733_v33, 0  ;;  %2927 = vmatmul.mubr.f32.gmra.mxu0 %v443_v55  ;;  %v3778_v34 = vld [vmem:[%s5218_s0 + $0xd0] sm:$0xff] }
  0x1e   :  { %5347 = vst [vmem:[#allocation27_spill] sm:$0xff] %v3747_v14  ;;  %v3769_v56 = vsub.f32 %v297_v45, %v3747_v14  ;;  %v3771_v7 = vand.u32 4294901760, %v749_v19  ;;  %v3773_v8 = vand.u32 4294901760, %v300_v2  ;;  %5352 = vst [vmem:[#allocation32_spill] sm:$0xff] %v3778_v34  ;;  %3028 = vmatprep.subr.mxu0 %v749_v19  ;;  %v249_v45 = vsel %vm123_vm0, %v3754_v37, 0 }
  0x1f   :  { %2953 = vmatprep.mubr.f32.mxu1 %v613_v47  ;;  %v623_v59 = vand.u32 4294901760, %v622_v48  ;;  %v452_v55 = vsub.f32 %v3740_v58, %v5249_v52  ;;  %v252_v18 = vsel %vm123_vm0, %v3759_v57, 0  ;;  %3029 = vmatpush3.msra.mxu0 %v749_v19  ;;  %v5353_v33 = vand.u32 4294901760, %v3745_v11  ;;  %v3798_v52 = vld [vmem:[%s5218_s0 + $0xd8] sm:$0xff] }
  0x20   :  { %5350 = vst [vmem:[#allocation30_spill] sm:$0xff] %v3769_v56  ;;  %5351 = vst [vmem:[#allocation31_spill] sm:$0xff] %v3773_v8  ;;  %v5258_v54 = vand.u32 4294901760, %v3769_v56  ;;  %v751_v47 = vsub.f32 %v749_v19, %v3771_v7  ;;  %v3793_v48 = vsub.f32 %v300_v2, %v3773_v8  ;;  %v3800_v57 = vand.u32 4294901760, %v249_v45  ;;  %v3809_v19 = vld [vmem:[%s5218_s0 + $0x50] sm:$0xff] }
  0x21   :  { %v462_v10 = vsub.f32 %v3745_v11, %v5353_v33  ;;  %5355 = vst [vmem:[#allocation34_spill] sm:$0xff] %v3798_v52  ;;  %2954 = vmatmul.mubr.f32.gmra.mxu1 %v623_v59  ;;  %v453_v37 = vand.u32 4294901760, %v452_v55  ;;  %v3802_v60 = vand.u32 4294901760, %v252_v18  ;;  %v303_v33 = vsel %vm123_vm0, %v3778_v34, 0  ;;  %5356 = vst [vmem:[#allocation35_spill] sm:$0xff] %v3809_v19 }
  0x22   :  { %5354 = vst [vmem:[#allocation33_spill] sm:$0xff] %v3793_v48  ;;  %v632_v23 = vsub.f32 %v3769_v56, %v5258_v54  ;;  %v752_v41 = vand.u32 4294901760, %v751_v47  ;;  %v5265_v59 = vand.u32 4294901760, %v3793_v48  ;;  %v3816_v55 = vsub.f32 %v249_v45, %v3800_v57 }
  0x23   :  { %v463_v2 = vand.u32 4294901760, %v462_v10  ;;  %2929 = vmatprep.mubr.f32.mxu0 %v453_v37  ;;  %v3819_v13 = vsub.f32 %v252_v18, %v3802_v60  ;;  %v3821_v34 = vand.u32 4294901760, %v303_v33  ;;  %v306_v20 = vsel %vm123_vm0, %v3798_v52, 0  ;;  %v3828_v10 = vld [vmem:[%s5218_s0 + $0x58] sm:$0xff]  ;;  %v3833_v37 = vld [vmem:[%s5218_s0 + $0xe0] sm:$0xff] }
  0x24   :  { %5358 = vst [vmem:[#allocation37_spill] sm:$0xff] %v3828_v10  ;;  %5359 = vst [vmem:[#allocation38_spill] sm:$0xff] %v3833_v37  ;;  %v633_v45 = vand.u32 4294901760, %v632_v23  ;;  %2972 = vmatprep.subr.mxu1 %v752_v41  ;;  %v642_v18 = vsub.f32 %v3793_v48, %v5265_v59  ;;  %v3838_v47 = vand.u32 4294901760, %v306_v20  ;;  %v255_v54 = vsel %vm123_vm0, %v3809_v19, 0 }
  0x25   :  { %5357 = vst [vmem:[#allocation36_spill] sm:$0xff] %v3821_v34  ;;  %2930 = vmatmul.mubr.f32.gmra.mxu0 %v463_v2  ;;  %2973 = vmatpush3.msra.mxu1 %v752_v41  ;;  %v5271_v52 = vand.u32 4294901760, %v3816_v55  ;;  %v3845_v8 = vsub.f32 %v303_v33, %v3821_v34  ;;  %v3847_v2 = vand.u32 4294901760, %v255_v54  ;;  %v258_v59 = vsel %vm123_vm0, %v3828_v10, 0 }
  0x26   :  { %5360 = vst [vmem:[#allocation39_spill] sm:$0xff] %v3838_v47  ;;  %2956 = vmatprep.mubr.f32.mxu1 %v633_v45  ;;  %v643_v23 = vand.u32 4294901760, %v642_v18  ;;  %v3850_v56 = vsub.f32 %v306_v20, %v3838_v47  ;;  %v309_v41 = vsel %vm123_vm0, %v3833_v37, 0  ;;  %v5363_v33 = vand.u32 4294901760, %v3819_v13 }
  0x27   :  { %5361 = vst [vmem:[#allocation40_spill] sm:$0xff] %v3845_v8  ;;  %v472_v12 = vsub.f32 %v3816_v55, %v5271_v52  ;;  %v5282_v45 = vand.u32 4294901760, %v3845_v8  ;;  %v3864_v18 = vsub.f32 %v255_v54, %v3847_v2  ;;  %v3867_v10 = vand.u32 4294901760, %v258_v59  ;;  %v3876_v52 = vld [vmem:[%s5218_s0 + $0xe8] sm:$0xff]  ;;  %v3881_v54 = vld [vmem:[%s5218_s0 + $0x60] sm:$0xff] }
  0x28   :  { %5362 = vst [vmem:[#allocation41_spill] sm:$0xff] %v3850_v56  ;;  %v482_v19 = vsub.f32 %v3819_v13, %v5363_v33  ;;  %2957 = vmatmul.mubr.f32.gmra.mxu1 %v643_v23  ;;  %v3869_v47 = vand.u32 4294901760, %v309_v41  ;;  %v756_v37 = vsub.f32 %v3454_v6, %v3467_v9  ;;  %5365 = vst [vmem:[#allocation43_spill] sm:$0xff] %v3876_v52  ;;  %v5367_v6 = vand.u32 4294901760, %v3850_v56 }
  0x29   :  { %5366 = vst [vmem:[#allocation44_spill] sm:$0xff] %v3881_v54  ;;  %v473_v23 = vand.u32 4294901760, %v472_v12  ;;  %v652_v20 = vsub.f32 %v3845_v8, %v5282_v45  ;;  %v5287_v48 = vand.u32 4294901760, %v3864_v18  ;;  %v3891_v42 = vsub.f32 %v258_v59, %v3867_v10  ;;  %v3901_v12 = vld [vmem:[%s5218_s0 + $0x68] sm:$0xff] }
  0x2a   :  { %5364 = vst [vmem:[#allocation42_spill] sm:$0xff] %v3869_v47  ;;  %v483_v33 = vand.u32 4294901760, %v482_v19  ;;  %v662_v34 = vsub.f32 %v3850_v56, %v5367_v6  ;;  %v3894_v14 = vsub.f32 %v309_v41, %v3869_v47  ;;  %v3896_v53 = vand.u32 4294901760, %v756_v37  ;;  %5369 = vst [vmem:[#allocation46_spill] sm:$0xff] %v3901_v12  ;;  %3030 = vmatprep.subr.mxu0 %v756_v37 }
  0x2b   :  { %2932 = vmatprep.mubr.f32.mxu0 %v473_v23  ;;  %v653_v19 = vand.u32 4294901760, %v652_v20  ;;  %v492_v6 = vsub.f32 %v3864_v18, %v5287_v48  ;;  %v312_v59 = vsel %vm123_vm0, %v3876_v52, 0  ;;  %v261_v41 = vsel %vm123_vm0, %v3881_v54, 0  ;;  %3031 = vmatpush3.msra.mxu0 %v756_v37  ;;  %v3916_v20 = vld [vmem:[%s5218_s0 + $0xf0] sm:$0xff]  ;;  %v3921_v48 = vld [vmem:[%s5218_s0 + $0xf8] sm:$0xff] }
  0x2c   :  { %5368 = vst [vmem:[#allocation45_spill] sm:$0xff] %v3894_v14  ;;  %2933 = vmatmul.mubr.f32.gmra.mxu0 %v483_v33  ;;  %v663_v45 = vand.u32 4294901760, %v662_v34  ;;  %v758_v23 = vsub.f32 %v756_v37, %v3896_v53  ;;  %5370 = vst [vmem:[#allocation47_spill] sm:$0xff] %v3916_v20  ;;  %3136 = vmatprep.subr.mxu0 %v3525_v26  ;;  %v3924_v33 = vand.u32 4294901760, %v312_v59  ;;  %v3926_v56 = vand.u32 4294901760, %v261_v41 }
  0x2d   :  { %5371 = vst [vmem:[#allocation48_spill] sm:$0xff] %v3921_v48  ;;  %2959 = vmatprep.mubr.f32.mxu1 %v653_v19  ;;  %v493_v34 = vand.u32 4294901760, %v492_v6  ;;  %v264_v37 = vsel %vm123_vm0, %v3901_v12, 0  ;;  %v5373_v47 = vand.u32 4294901760, %v3891_v42  ;;  %v5374_v54 = vand.u32 4294901760, %v3894_v14  ;;  %v3941_v19 = vld [vmem:[%s5218_s0 + $0x70] sm:$0xff] }
  0x2e   :  { %5372 = vst [vmem:[#allocation49_spill] sm:$0xff] %v3924_v33  ;;  %2960 = vmatmul.mubr.f32.gmra.mxu1 %v663_v45  ;;  %v759_v0 = vand.u32 4294901760, %v758_v23  ;;  %v3936_v61 = vand.u32 4294901760, %v264_v37  ;;  %5375 = vst [vmem:[#allocation50_spill] sm:$0xff] %v3941_v19  ;;  %v3944_v6 = vsub.f32 %v312_v59, %v3924_v33  ;;  %v3947_v45 = vsub.f32 %v261_v41, %v3926_v56  ;;  %v3956_v23 = vld [vmem:[%s5218_s0 + $0x78] sm:$0xff] }
  0x2f   :  { %v502_v52 = vsub.f32 %v3891_v42, %v5373_v47  ;;  %v672_v8 = vsub.f32 %v3894_v14, %v5374_v54  ;;  %2935 = vmatprep.mubr.f32.mxu0 %v493_v34  ;;  %v315_v47 = vsel %vm123_vm0, %v3916_v20, 0  ;;  %v318_v54 = vsel %vm123_vm0, %v3921_v48, 0  ;;  %5377 = vst [vmem:[#allocation52_spill] sm:$0xff] %v3956_v23 }
  0x30   :  { %5376 = vst [vmem:[#allocation51_spill] sm:$0xff] %v3944_v6  ;;  %2974 = vmatprep.subr.mxu1 %v759_v0  ;;  %v3959_v59 = vsub.f32 %v264_v37, %v3936_v61  ;;  %v3961_v34 = vand.u32 4294901760, %v315_v47  ;;  %v3965_v33 = vand.u32 4294901760, %v318_v54  ;;  %v267_v48 = vsel %vm123_vm0, %v3941_v19, 0 }
  0x31   :  { %v503_v12 = vand.u32 4294901760, %v502_v52  ;;  %v673_v14 = vand.u32 4294901760, %v672_v8  ;;  %2975 = vmatpush3.msra.mxu1 %v759_v0  ;;  %v3973_v37 = vand.u32 4294901760, %v267_v48  ;;  %v270_v41 = vsel %vm123_vm0, %v3956_v23, 0 }
  0x32   :  { %5378 = vst [vmem:[#allocation53_spill] sm:$0xff] %v3961_v34  ;;  %5379 = vst [vmem:[#allocation54_spill] sm:$0xff] %v3965_v33  ;;  %v5321_v8 = vand.u32 4294901760, %v3959_v59  ;;  %v3971_v52 = vsub.f32 %v315_v47, %v3961_v34  ;;  %v5380_v0 = vand.u32 4294901760, %v3944_v6  ;;  %v5381_v44 = vand.u32 4294901760, %v3947_v45  ;;  %3080 = vmatprep.subr.mxu1 %v3443_v3 }
  0x33   :  { %2936 = vmatmul.mubr.f32.gmra.mxu0 %v503_v12  ;;  %2962 = vmatprep.mubr.f32.mxu1 %v673_v14  ;;  %v3984_v14 = vsub.f32 %v318_v54, %v3965_v33  ;;  %v3986_v12 = vand.u32 4294901760, %v270_v41  ;;  %v3994_v34 = vsub.f32 %v267_v48, %v3973_v37 }
  0x34   :  { %v682_v20 = vsub.f32 %v3944_v6, %v5380_v0  ;;  %v512_v19 = vsub.f32 %v3947_v45, %v5381_v44  ;;  %v522_v47 = vsub.f32 %v3959_v59, %v5321_v8  ;;  %v5317_v23 = vand.u32 4294901760, %v3971_v52  ;;  %v5395_v8 = vld [vmem:[#allocation40_spill] sm:$0xff] }
  0x35   :  { %v5318_v44 = vand.u32 4294901760, %v3984_v14  ;;  %v3998_v54 = vsub.f32 %v270_v41, %v3986_v12  ;;  %v5320_v46 = vand.u32 4294901760, %v3994_v34 }
  0x36   :  { %v683_v0 = vand.u32 4294901760, %v682_v20  ;;  %v513_v6 = vand.u32 4294901760, %v512_v19  ;;  %v523_v33 = vand.u32 4294901760, %v522_v47  ;;  %v692_v51 = vsub.f32 %v3971_v52, %v5317_v23 }
  0x37   :  { %v702_v48 = vsub.f32 %v3984_v14, %v5318_v44  ;;  %v5319_v20 = vand.u32 4294901760, %v3998_v54  ;;  %v532_v41 = vsub.f32 %v3994_v34, %v5320_v46  ;;  %v4086_v44 = vld [vmem:[%s5219_s1] ss:$0 sm:$0xff] }
  0x38   :  { %2963 = vmatmul.mubr.f32.gmra.mxu1 %v683_v0  ;;  %2938 = vmatprep.mubr.f32.mxu0 %v513_v6  ;;  %v693_v19 = vand.u32 4294901760, %v692_v51  ;;  %v5385_v51 = vld [vmem:[#allocation18_spill] sm:$0xff] }
  0x39   :  { %2939 = vmatmul.mubr.f32.gmra.mxu0 %v523_v33  ;;  %v703_v47 = vand.u32 4294901760, %v702_v48  ;;  %v542_v23 = vsub.f32 %v3998_v54, %v5319_v20  ;;  %v533_v0 = vand.u32 4294901760, %v532_v41  ;;  %v5387_v33 = vld [vmem:[#allocation23_spill] sm:$0xff]  ;;  %v5389_v48 = vld [vmem:[#allocation25_spill] sm:$0xff] }
  0x3a   :  { %2965 = vmatprep.mubr.f32.mxu1 %v693_v19  ;;  %v5390_v19 = vld [vmem:[#allocation30_spill] sm:$0xff]  ;;  %v5391_v41 = vld [vmem:[#allocation31_spill] sm:$0xff]  ;;  %v5394_v20 = vld [vmem:[#allocation33_spill] sm:$0xff] }
  0x3b   :  { %v543_v6 = vand.u32 4294901760, %v542_v23  ;;  %2941 = vmatprep.mubr.f32.mxu0 %v533_v0  ;;  %v5388_v23 = vld [vmem:[#allocation27_spill] sm:$0xff] }
  0x3c   :  { %2966 = vmatmul.mubr.f32.gmra.mxu1 %v703_v47  ;;  %v5392_v47 = vld [vmem:[#allocation4_spill] sm:$0xff] }
  0x3d   :  { %2976 = vmatprep.mubr.f32.mxu1 %v3511_v21  ;;  %2942 = vmatmul.mubr.f32.gmra.mxu0 %v543_v6  ;;  %v52_v0 = vmul.f32 %v5392_v47, %v5392_v47  ;;  %v5393_v6 = vld [vmem:[#allocation36_spill] sm:$0xff] }
  0x3e   :  { %3032 = vmatprep.mubr.f32.mxu0 %v3535_v29 }
  0x3f   :  { %v91_v46 = vmul.f32 %v4086_v44, %v52_v0 }
  0x40   :  { %2977 = vmatmul.mubr.f32.vlgmr.msra.gmra.mxu1 %v3530_v28 }
  0x41   :  { %3081 = vmatpush3.msra.mxu1 %v3443_v3  ;;  %2979 = vmatprep.mubr.f32.mxu1 %v3561_v40 }
  0x42   :  { %3033 = vmatmul.mubr.f32.vlgmr.msra.gmra.mxu0 %v3550_v36  ;;  %3082 = vmatprep.subr.mxu1 %v3446_v4 }
  0x43   :  { %3035 = vmatprep.mubr.f32.mxu0 %v3585_v49  ;;  %3083 = vmatpush3.msra.mxu1 %v3446_v4 }
  0x44   :  { %2980 = vmatmul.mubr.f32.gmra.mxu1 %v3615_v62  ;;  %3084 = vmatprep.subr.mxu1 %v3449_v5 }
  0x45   :  { %2982 = vmatprep.mubr.f32.mxu1 %v3650_v43  ;;  %3085 = vmatpush3.msra.mxu1 %v3449_v5 }
  0x46   :  { %3036 = vmatmul.mubr.f32.gmra.mxu0 %v3637_v1  ;;  %3086 = vmatprep.subr.mxu1 %v3467_v9 }
  0x47   :  { %3038 = vmatprep.mubr.f32.mxu0 %v3669_v16  ;;  %3087 = vmatpush3.msra.mxu1 %v3467_v9 }
  0x48   :  { %2983 = vmatmul.mubr.f32.gmra.mxu1 %v3671_v63  ;;  %3137 = vmatpush3.msra.mxu0 %v3525_v26  ;;  %v5383_v26 = vld [vmem:[#allocation16_spill] sm:$0xff] }
  0x49   :  { %2985 = vmatprep.mubr.f32.mxu1 %v3721_v24  ;;  %3138 = vmatprep.subr.mxu0 %v3639_v32 }
  0x4a   :  { %3039 = vmatmul.mubr.f32.gmra.mxu0 %v3691_v35  ;;  %3192 = vmatprep.subr.mxu1 %v3443_v3 }
  0x4b   :  { %3041 = vmatprep.mubr.f32.mxu0 %v3740_v58  ;;  %3139 = vmatpush3.msra.mxu0 %v3639_v32  ;;  %v5384_v32 = vld [vmem:[#allocation20_spill] sm:$0xff] }
  0x4c   :  { %2986 = vmatmul.mubr.f32.gmra.mxu1 %v3728_v50  ;;  %3140 = vmatprep.subr.mxu0 %v3771_v7 }
  0x4d   :  { %2988 = vmatprep.mubr.f32.mxu1 %v3800_v57  ;;  %3141 = vmatpush3.msra.mxu0 %v3771_v7  ;;  %v5382_v7 = vld [vmem:[#allocation15_spill] sm:$0xff] }
  0x4e   :  { %3042 = vmatmul.mubr.f32.gmra.mxu0 %v3745_v11  ;;  %3142 = vmatprep.subr.mxu0 %v3896_v53 }
  0x4f   :  { %3044 = vmatprep.mubr.f32.mxu0 %v3816_v55  ;;  %3143 = vmatpush3.msra.mxu0 %v3896_v53  ;;  %v5386_v53 = vld [vmem:[#allocation22_spill] sm:$0xff] }
  0x50   :  { %2989 = vmatmul.mubr.f32.gmra.mxu1 %v3802_v60 }
  0x51   :  { %2991 = vmatprep.mubr.f32.mxu1 %v3847_v2 }
  0x52   :  { %3045 = vmatmul.mubr.f32.gmra.mxu0 %v3819_v13 }
  0x53   :  { %3047 = vmatprep.mubr.f32.mxu0 %v3864_v18 }
  0x54   :  { %2992 = vmatmul.mubr.f32.gmra.mxu1 %v3867_v10 }
  0x55   :  { %2994 = vmatprep.mubr.f32.mxu1 %v3926_v56 }
  0x56   :  { %3048 = vmatmul.mubr.f32.gmra.mxu0 %v3891_v42 }
  0x57   :  { %3050 = vmatprep.mubr.f32.mxu0 %v3947_v45 }
  0x58   :  { %2995 = vmatmul.mubr.f32.gmra.mxu1 %v3936_v61 }
  0x59   :  { %2997 = vmatprep.mubr.f32.mxu1 %v3973_v37 }
  0x5a   :  { %3051 = vmatmul.mubr.f32.gmra.mxu0 %v3959_v59 }
  0x5b   :  { %3053 = vmatprep.mubr.f32.mxu0 %v3994_v34 }
  0x5c   :  { %2998 = vmatmul.mubr.f32.gmra.mxu1 %v3986_v12 }
  0x5d   :  { %3000 = vmatprep.mubr.f32.mxu1 %v3490_v15 }
  0x5e   :  { %3054 = vmatmul.mubr.f32.gmra.mxu0 %v3998_v54 }
  0x5f   :  { %3056 = vmatprep.mubr.f32.mxu0 %v3522_v25 }
  0x60   :  { %3001 = vmatmul.mubr.f32.gmra.mxu1 %v3495_v17 }
  0x61   :  { %3003 = vmatprep.mubr.f32.mxu1 %v3537_v30 }
  0x62   :  { %3057 = vmatmul.mubr.f32.gmra.mxu0 %v3528_v27 }
  0x63   :  { %3059 = vmatprep.mubr.f32.mxu0 %v3556_v38 }
  0x64   :  { %3004 = vmatmul.mubr.f32.gmra.mxu1 %v3539_v31 }
  0x65   :  { %3006 = vmatprep.mubr.f32.mxu1 %v3624_v22 }
  0x66   :  { %3060 = vmatmul.mubr.f32.gmra.mxu0 %v3559_v39 }
  0x67   :  { %3062 = vmatprep.mubr.f32.mxu0 %v5382_v7 }
  0x68   :  { %3007 = vmatmul.mubr.f32.gmra.mxu1 %v5383_v26  ;;  %v5403_v26 = vld [vmem:[#allocation9_spill] sm:$0xff] }
  0x69   :  { %3009 = vmatprep.mubr.f32.mxu1 %v5384_v32  ;;  %v5400_v32 = vld [vmem:[#allocation41_spill] sm:$0xff] }
  0x6a   :  { %3063 = vmatmul.mubr.f32.gmra.mxu0 %v5385_v51 }
  0x6b   :  { %3065 = vmatprep.mubr.f32.mxu0 %v5386_v53  ;;  %v5404_v53 = vld [vmem:[#allocation53_spill] sm:$0xff] }
  0x6c   :  { %3010 = vmatmul.mubr.f32.gmra.mxu1 %v5387_v33  ;;  %v5397_v33 = vld [vmem:[#allocation8_spill] sm:$0xff] }
  0x6d   :  { %3012 = vmatprep.mubr.f32.mxu1 %v5388_v23  ;;  %v5396_v23 = vld [vmem:[#allocation39_spill] sm:$0xff]  ;;  %v54_v47 = vmul.f32 %v5397_v33, %v5397_v33 }
  0x6e   :  { %3066 = vmatmul.mubr.f32.gmra.mxu0 %v5389_v48  ;;  %v5399_v48 = vld [vmem:[#allocation42_spill] sm:$0xff] }
  0x6f   :  { %3068 = vmatprep.mubr.f32.mxu0 %v5390_v19  ;;  %v5398_v19 = vld [vmem:[#allocation5_spill] sm:$0xff] }
  0x70   :  { %3013 = vmatmul.mubr.f32.gmra.mxu1 %v5391_v41  ;;  %v124_v41 = vsel %vm123_vm0, %v91_v46, 0.0 }
  0x71   :  { %3015 = vmatprep.mubr.f32.mxu1 %v5393_v6  ;;  %v53_v6 = vmul.f32 %v5398_v19, %v5398_v19  ;;  %125 = vadd.xlane.f32.xlu0 %v124_v41  ;;  %v55_v19 = vmul.f32 %v5403_v26, %v5403_v26  ;;  %v5405_v41 = vld [vmem:[#allocation51_spill] sm:$0xff] }
  0x72   :  { %3069 = vmatmul.mubr.f32.gmra.mxu0 %v5394_v20  ;;  %v93_v20 = vmul.f32 %v4086_v44, %v54_v47 }
  0x73   :  { %3071 = vmatprep.mubr.f32.mxu0 %v5395_v8  ;;  %v92_v0 = vmul.f32 %v4086_v44, %v53_v6  ;;  %v5401_v8 = vld [vmem:[#allocation45_spill] sm:$0xff]  ;;  %v94_v47 = vmul.f32 %v4086_v44, %v55_v19  ;;  %v5406_v6 = vld [vmem:[#allocation54_spill] sm:$0xff]  ;;  %v5410_v19 = vand.u32 4294901760, %v3550_v36 }
  0x74   :  { %3016 = vmatmul.mubr.f32.gmra.mxu1 %v5396_v23  ;;  %v5402_v23 = vld [vmem:[#allocation49_spill] sm:$0xff]  ;;  %v130_v46 = vsel %vm123_vm0, %v93_v20, 0.0  ;;  %v5407_v20 = vand.u32 4294901760, %v3535_v29 }
  0x75   :  { %3018 = vmatprep.mubr.f32.mxu1 %v5399_v48  ;;  %v127_v33 = vsel %vm123_vm0, %v92_v0, 0.0  ;;  %131 = vadd.xlane.f32.xlu1 %v130_v46  ;;  %v5408_v0 = vld [vmem:[#allocation13_spill] sm:$0xff]  ;;  %v5409_v46 = vld [vmem:[#allocation12_spill] sm:$0xff] }
  0x76   :  { %3072 = vmatmul.mubr.f32.gmra.mxu0 %v5400_v32  ;;  %128 = vadd.xlane.f32.xlu0 %v127_v33  ;;  %v57_v26 = vmul.f32 %v5408_v0, %v5408_v0  ;;  %v56_v33 = vmul.f32 %v5409_v46, %v5409_v46  ;;  %v5413_v46 = vld [vmem:[#allocation19_spill] sm:$0xff] }
  0x77   :  { %3074 = vmatprep.mubr.f32.mxu0 %v5401_v8  ;;  %v58_v36 = vmul.f32 %v5413_v46, %v5413_v46  ;;  %v5420_v46 = vld [vmem:[#allocation37_spill] sm:$0xff] }
  0x78   :  { %3019 = vmatmul.mubr.f32.gmra.mxu1 %v5402_v23  ;;  %v133_v23 = vsel %vm123_vm0, %v94_v47, 0.0  ;;  %v5411_v47 = vand.u32 4294901760, %v3585_v49  ;;  %v96_v29 = vmul.f32 %v4086_v44, %v57_v26  ;;  %v95_v0 = vmul.f32 %v4086_v44, %v56_v33 }
  0x79   :  { %3021 = vmatprep.mubr.f32.mxu1 %v5404_v53  ;;  %134 = vadd.xlane.f32.xlu1 %v133_v23  ;;  %v5412_v23 = vld [vmem:[#allocation21_spill] sm:$0xff]  ;;  %v5415_v49 = vand.u32 4294901760, %v3669_v16 }
  0x7a   :  { %3075 = vmatmul.mubr.f32.gmra.mxu0 %v5405_v41  ;;  %v139_v26 = vsel %vm123_vm0, %v96_v29, 0.0  ;;  %v5419_v29 = vand.u32 4294901760, %v3740_v58  ;;  %v5422_v58 = vand.u32 4294901760, %v3745_v11  ;;  %v5425_v11 = vld [vmem:[#allocation44_spill] sm:$0xff] }
  0x7b   :  { %3077 = vmatprep.mubr.f32.mxu0 %v3971_v52 }
  0x7c   :  { %3022 = vmatmul.mubr.f32.gmra.mxu1 %v5406_v6 }
  0x7d   :  { %3088 = vmatprep.mubr.f32.mxu1 %v5407_v20  ;;  %v59_v20 = vmul.f32 %v5412_v23, %v5412_v23  ;;  %v5417_v23 = vld [vmem:[#allocation28_spill] sm:$0xff]  ;;  %140 = vadd.xlane.f32.xlu1 %v139_v26  ;;  %v5423_v26 = vand.u32 4294901760, %v3816_v55  ;;  %v5426_v55 = vand.u32 4294901760, %v3819_v13  ;;  %v5429_v13 = vld [vmem:[#allocation50_spill] sm:$0xff] }
  0x7e   :  { %3078 = vmatmul.mubr.f32.gmra.mxu0 %v3984_v14  ;;  %v60_v16 = vmul.f32 %v5417_v23, %v5417_v23 }
  0x7f   :  { %3144 = vmatprep.mubr.f32.mxu0 %v3511_v21  ;;  %v98_v33 = vmul.f32 %v4086_v44, %v59_v20 }
  0x80   :  { %3089 = vmatmul.mubr.f32.vlgmr.msra.gmra.mxu1 %v5410_v19  ;;  %v5416_v19 = vld [vmem:[#allocation29_spill] sm:$0xff] }
  0x81   :  { %3193 = vmatpush3.msra.mxu1 %v3443_v3  ;;  %3091 = vmatprep.mubr.f32.mxu1 %v5411_v47  ;;  %v5414_v3 = vand.u32 4294901760, %v3637_v1  ;;  %v61_v47 = vmul.f32 %v5416_v19, %v5416_v19  ;;  %v97_v1 = vmul.f32 %v4086_v44, %v58_v36  ;;  %v145_v20 = vsel %vm123_vm0, %v98_v33, 0.0 }
  0x82   :  { %3145 = vmatmul.mubr.f32.vlgmr.msra.gmra.mxu0 %v3530_v28  ;;  %3194 = vmatprep.subr.mxu1 %v3446_v4  ;;  %v63_v36 = vmul.f32 %v5420_v46, %v5420_v46 }
  0x83   :  { %3147 = vmatprep.mubr.f32.mxu0 %v3561_v40  ;;  %3195 = vmatpush3.msra.mxu1 %v3446_v4  ;;  %v136_v4 = vsel %vm123_vm0, %v95_v0, 0.0  ;;  %v100_v0 = vmul.f32 %v4086_v44, %v61_v47  ;;  %v5424_v47 = vld [vmem:[#allocation46_spill] sm:$0xff] }
  0x84   :  { %3092 = vmatmul.mubr.f32.gmra.mxu1 %v5414_v3  ;;  %3196 = vmatprep.subr.mxu1 %v3449_v5  ;;  %v142_v3 = vsel %vm123_vm0, %v97_v1, 0.0  ;;  %v102_v19 = vmul.f32 %v4086_v44, %v63_v36 }
  0x85   :  { %3094 = vmatprep.mubr.f32.mxu1 %v5415_v49  ;;  %3197 = vmatpush3.msra.mxu1 %v3449_v5  ;;  %v5418_v5 = vand.u32 4294901760, %v3691_v35  ;;  %v5421_v35 = vld [vmem:[#allocation35_spill] sm:$0xff]  ;;  %v151_v33 = vsel %vm123_vm0, %v100_v0, 0.0  ;;  %v5428_v0 = vld [vmem:[#allocation52_spill] sm:$0xff] }
  0x86   :  { %3148 = vmatmul.mubr.f32.gmra.mxu0 %v3615_v62  ;;  %3198 = vmatprep.subr.mxu1 %v3467_v9  ;;  %v62_v49 = vmul.f32 %v5421_v35, %v5421_v35  ;;  %v67_v46 = vmul.f32 %v5428_v0, %v5428_v0  ;;  %v5431_v35 = vand.u32 4294901760, %v3947_v45  ;;  %v5434_v45 = vand.u32 4294901760, %v3959_v59  ;;  %v5437_v59 = vld [vmem:[#allocation6_spill] sm:$0xff] }
  0x87   :  { %3150 = vmatprep.mubr.f32.mxu0 %v3650_v43  ;;  %3199 = vmatpush3.msra.mxu1 %v3467_v9  ;;  %v99_v9 = vmul.f32 %v4086_v44, %v60_v16  ;;  %v64_v16 = vmul.f32 %v5425_v11, %v5425_v11  ;;  %v5439_v0 = vand.u32 4294901760, %v3522_v25  ;;  %v5442_v25 = vand.u32 4294901760, %v3528_v27  ;;  %v5445_v27 = vld [vmem:[#allocation14_spill] sm:$0xff] }
  0x88   :  { %3095 = vmatmul.mubr.f32.gmra.mxu1 %v5418_v5  ;;  %137 = vadd.xlane.f32.xlu0 %v136_v4  ;;  %v65_v4 = vmul.f32 %v5424_v47, %v5424_v47  ;;  %v101_v23 = vmul.f32 %v4086_v44, %v62_v49  ;;  %v5427_v5 = vand.u32 4294901760, %v3864_v18  ;;  %v5430_v18 = vand.u32 4294901760, %v3891_v42  ;;  %v5433_v42 = vld [vmem:[#allocation2_spill] sm:$0xff] }
  0x89   :  { %3097 = vmatprep.mubr.f32.mxu1 %v5419_v29  ;;  %146 = vadd.xlane.f32.xlu1 %v145_v20  ;;  %v148_v1 = vsel %vm123_vm0, %v99_v9, 0.0  ;;  %v157_v29 = vsel %vm123_vm0, %v102_v19, 0.0  ;;  %v66_v9 = vmul.f32 %v5429_v13, %v5429_v13 }
  0x8a   :  { %3151 = vmatmul.mubr.f32.gmra.mxu0 %v3671_v63  ;;  %v104_v20 = vmul.f32 %v4086_v44, %v65_v4  ;;  %v154_v36 = vsel %vm123_vm0, %v101_v23, 0.0  ;;  %v68_v4 = vmul.f32 %v5433_v42, %v5433_v42 }
  0x8b   :  { %3153 = vmatprep.mubr.f32.mxu0 %v3721_v24  ;;  %v105_v47 = vmul.f32 %v4086_v44, %v66_v9 }
  0x8c   :  { %3098 = vmatmul.mubr.f32.gmra.mxu1 %v5422_v58  ;;  %143 = vadd.xlane.f32.xlu0 %v142_v3  ;;  %v103_v3 = vmul.f32 %v4086_v44, %v64_v16  ;;  %v163_v49 = vsel %vm123_vm0, %v104_v20, 0.0  ;;  %v106_v58 = vmul.f32 %v4086_v44, %v67_v46  ;;  %v5436_v16 = vld [vmem:[#allocation7_spill] sm:$0xff]  ;;  %v70_v20 = vmul.f32 %v5437_v59, %v5437_v59  ;;  %v5451_v59 = vld [vmem:[#allocation22_spill] sm:$0xff] }
  0x8d   :  { %3100 = vmatprep.mubr.f32.mxu1 %v5423_v26  ;;  %152 = vadd.xlane.f32.xlu1 %v151_v33  ;;  %v5432_v26 = vld [vmem:[#allocation3_spill] sm:$0xff] }
  0x8e   :  { %3154 = vmatmul.mubr.f32.gmra.mxu0 %v3728_v50  ;;  %v69_v33 = vmul.f32 %v5432_v26, %v5432_v26  ;;  %v160_v19 = vsel %vm123_vm0, %v103_v3, 0.0  ;;  %v169_v23 = vsel %vm123_vm0, %v106_v58, 0.0  ;;  %v5440_v3 = vld [vmem:[#allocation11_spill] sm:$0xff] }
  0x8f   :  { %3156 = vmatprep.mubr.f32.mxu0 %v3800_v57  ;;  %v73_v13 = vmul.f32 %v5440_v3, %v5440_v3  ;;  %v5454_v3 = vld [vmem:[#allocation16_spill] sm:$0xff] }
  0x90   :  { %3101 = vmatmul.mubr.f32.gmra.mxu1 %v5426_v55  ;;  %149 = vadd.xlane.f32.xlu0 %v148_v1  ;;  %v5435_v1 = vand.u32 4294901760, %v3994_v34  ;;  %v108_v11 = vmul.f32 %v4086_v44, %v69_v33  ;;  %v71_v55 = vmul.f32 %v5436_v16, %v5436_v16  ;;  %v5438_v34 = vand.u32 4294901760, %v3998_v54  ;;  %v5441_v54 = vld [vmem:[#allocation10_spill] sm:$0xff]  ;;  %v5444_v33 = vld [vmem:[#allocation17_spill] sm:$0xff] }
  0x91   :  { %3103 = vmatprep.mubr.f32.mxu1 %v5427_v5  ;;  %158 = vadd.xlane.f32.xlu1 %v157_v29  ;;  %v166_v5 = vsel %vm123_vm0, %v105_v47, 0.0  ;;  %v107_v29 = vmul.f32 %v4086_v44, %v68_v4  ;;  %v112_v26 = vmul.f32 %v4086_v44, %v73_v13  ;;  %v74_v4 = vmul.f32 %v5445_v27, %v5445_v27 }
  0x92   :  { %3157 = vmatmul.mubr.f32.gmra.mxu0 %v3802_v60  ;;  %v175_v46 = vsel %vm123_vm0, %v108_v11, 0.0  ;;  %v5448_v11 = vld [vmem:[#allocation26_spill] sm:$0xff] }
  0x93   :  { %3159 = vmatprep.mubr.f32.mxu0 %v3847_v2  ;;  %v172_v9 = vsel %vm123_vm0, %v107_v29, 0.0  ;;  %v77_v16 = vmul.f32 %v5448_v11, %v5448_v11 }
  0x94   :  { %3104 = vmatmul.mubr.f32.gmra.mxu1 %v5430_v18  ;;  %155 = vadd.xlane.f32.xlu0 %v154_v36  ;;  %v110_v36 = vmul.f32 %v4086_v44, %v71_v55  ;;  %v109_v18 = vmul.f32 %v4086_v44, %v70_v20  ;;  %v5452_v20 = vand.u32 4294901760, %v5451_v59  ;;  %v5470_v59 = vld [vmem:[#allocation31_spill] sm:$0xff] }
  0x95   :  { %3106 = vmatprep.mubr.f32.mxu1 %v5431_v35  ;;  %164 = vadd.xlane.f32.xlu1 %v163_v49  ;;  %v72_v35 = vmul.f32 %v5441_v54, %v5441_v54  ;;  %v5443_v49 = vand.u32 4294901760, %v3556_v38  ;;  %v5446_v38 = vand.u32 4294901760, %v3559_v39  ;;  %v5449_v39 = vld [vmem:[#allocation24_spill] sm:$0xff] }
  0x96   :  { %3160 = vmatmul.mubr.f32.gmra.mxu0 %v3867_v10  ;;  %v181_v58 = vsel %vm123_vm0, %v110_v36, 0.0  ;;  %v178_v47 = vsel %vm123_vm0, %v109_v18, 0.0  ;;  %v76_v29 = vmul.f32 %v5449_v39, %v5449_v39  ;;  %v5456_v54 = vld [vmem:[#allocation20_spill] sm:$0xff] }
  0x97   :  { %3162 = vmatprep.mubr.f32.mxu0 %v3926_v56  ;;  %v111_v42 = vmul.f32 %v4086_v44, %v72_v35  ;;  %v5457_v35 = vld [vmem:[#allocation25_spill] sm:$0xff] }
  0x98   :  { %3107 = vmatmul.mubr.f32.gmra.mxu1 %v5434_v45  ;;  %161 = vadd.xlane.f32.xlu0 %v160_v19  ;;  %v75_v19 = vmul.f32 %v5444_v33, %v5444_v33  ;;  %v5447_v45 = vand.u32 4294901760, %v5382_v7  ;;  %v5450_v7 = vand.u32 4294901760, %v5385_v51  ;;  %v5455_v51 = vld [vmem:[#allocation32_spill] sm:$0xff] }
  0x99   :  { %3109 = vmatprep.mubr.f32.mxu1 %v5435_v1  ;;  %170 = vadd.xlane.f32.xlu1 %v169_v23  ;;  %v187_v1 = vsel %vm123_vm0, %v112_v26, 0.0  ;;  %v184_v55 = vsel %vm123_vm0, %v111_v42, 0.0  ;;  %v78_v18 = vmul.f32 %v5455_v51, %v5455_v51  ;;  %v5462_v42 = vld [vmem:[#allocation23_spill] sm:$0xff] }
  0x9a   :  { %3163 = vmatmul.mubr.f32.gmra.mxu0 %v3936_v61  ;;  %v114_v23 = vmul.f32 %v4086_v44, %v75_v19  ;;  %v5461_v19 = vld [vmem:[#allocation43_spill] sm:$0xff] }
  0x9b   :  { %3165 = vmatprep.mubr.f32.mxu0 %v3973_v37 }
  0x9c   :  { %3110 = vmatmul.mubr.f32.gmra.mxu1 %v5438_v34  ;;  %167 = vadd.xlane.f32.xlu0 %v166_v5  ;;  %v113_v5 = vmul.f32 %v4086_v44, %v74_v4  ;;  %v193_v34 = vsel %vm123_vm0, %v114_v23, 0.0  ;;  %v117_v4 = vmul.f32 %v4086_v44, %v78_v18  ;;  %v5465_v23 = vld [vmem:[#allocation33_spill] sm:$0xff] }
  0x9d   :  { %3112 = vmatprep.mubr.f32.mxu1 %v5439_v0  ;;  %176 = vadd.xlane.f32.xlu1 %v175_v46  ;;  %v116_v0 = vmul.f32 %v4086_v44, %v77_v16  ;;  %v5453_v46 = vld [vmem:[#allocation34_spill] sm:$0xff]  ;;  %v5466_v11 = vand.u32 4294901760, %v5465_v23  ;;  %v5467_v16 = vld [vmem:[#allocation40_spill] sm:$0xff] }
  0x9e   :  { %3166 = vmatmul.mubr.f32.gmra.mxu0 %v3986_v12  ;;  %v79_v36 = vmul.f32 %v5453_v46, %v5453_v46  ;;  %v190_v13 = vsel %vm123_vm0, %v113_v5, 0.0 }
  0x9f   :  { %3168 = vmatprep.mubr.f32.mxu0 %v3490_v15  ;;  %v199_v26 = vsel %vm123_vm0, %v116_v0, 0.0  ;;  %v5471_v0 = vld [vmem:[#allocation47_spill] sm:$0xff] }
  0xa0   :  { %3113 = vmatmul.mubr.f32.gmra.mxu1 %v5442_v25  ;;  %173 = vadd.xlane.f32.xlu0 %v172_v9  ;;  %v115_v9 = vmul.f32 %v4086_v44, %v76_v29  ;;  %v5458_v25 = vand.u32 4294901760, %v5457_v35  ;;  %v118_v33 = vmul.f32 %v4086_v44, %v79_v36  ;;  %v5469_v29 = vld [vmem:[#allocation48_spill] sm:$0xff]  ;;  %v82_v46 = vmul.f32 %v5471_v0, %v5471_v0  ;;  %v5475_v35 = vld [vmem:[#allocation39_spill] sm:$0xff] }
  0xa1   :  { %3115 = vmatprep.mubr.f32.mxu1 %v5443_v49  ;;  %182 = vadd.xlane.f32.xlu1 %v181_v58  ;;  %v5459_v49 = vld [vmem:[#allocation30_spill] sm:$0xff]  ;;  %v5472_v36 = vld [vmem:[#allocation36_spill] sm:$0xff] }
  0xa2   :  { %3169 = vmatmul.mubr.f32.gmra.mxu0 %v3495_v17  ;;  %v5460_v58 = vand.u32 4294901760, %v5459_v49  ;;  %v196_v27 = vsel %vm123_vm0, %v115_v9, 0.0  ;;  %v205_v5 = vsel %vm123_vm0, %v118_v33, 0.0  ;;  %v5474_v9 = vand.u32 4294901760, %v5401_v8 }
  0xa3   :  { %3171 = vmatprep.mubr.f32.mxu0 %v3537_v30  ;;  %v121_v49 = vmul.f32 %v4086_v44, %v82_v46  ;;  %v5477_v8 = vand.u32 4294901760, %v3971_v52 }
  0xa4   :  { %3116 = vmatmul.mubr.f32.gmra.mxu1 %v5446_v38  ;;  %179 = vadd.xlane.f32.xlu0 %v178_v47  ;;  %v81_v47 = vmul.f32 %v5461_v19, %v5461_v19  ;;  %v5463_v38 = vld [vmem:[#allocation38_spill] sm:$0xff]  ;;  %v2379_v19 = vld [vmem:[%s5220_s4 + $0x50] sm:$0xff] }
  0xa5   :  { %3118 = vmatprep.mubr.f32.mxu1 %v5447_v45  ;;  %188 = vadd.xlane.f32.xlu1 %v187_v1  ;;  %v80_v45 = vmul.f32 %v5463_v38, %v5463_v38  ;;  %v5464_v1 = vld [vmem:[#allocation27_spill] sm:$0xff]  ;;  %v214_v33 = vsel %vm123_vm0, %v121_v49, 0.0 }
  0xa6   :  { %3172 = vmatmul.mubr.f32.gmra.mxu0 %v3539_v31  ;;  %v120_v39 = vmul.f32 %v4086_v44, %v81_v47 }
  0xa7   :  { %3174 = vmatprep.mubr.f32.mxu0 %v3624_v22 }
  0xa8   :  { %3119 = vmatmul.mubr.f32.gmra.mxu1 %v5450_v7  ;;  %185 = vadd.xlane.f32.xlu0 %v184_v55  ;;  %v5468_v55 = vand.u32 4294901760, %v5467_v16  ;;  %v83_v7 = vmul.f32 %v5469_v29, %v5469_v29  ;;  %v211_v51 = vsel %vm123_vm0, %v120_v39, 0.0  ;;  %v2376_v16 = vld [vmem:[%s5220_s4 + $0x38] sm:$0xff] }
  0xa9   :  { %3121 = vmatprep.mubr.f32.mxu1 %v5452_v20  ;;  %194 = vadd.xlane.f32.xlu1 %v193_v34  ;;  %v202_v20 = vsel %vm123_vm0, %v117_v4, 0.0  ;;  %v119_v34 = vmul.f32 %v4086_v44, %v80_v45  ;;  %v2378_v4 = vld [vmem:[%s5220_s4 + $0x48] sm:$0xff] }
  0xaa   :  { %3175 = vmatmul.mubr.f32.gmra.mxu0 %v5454_v3  ;;  %v122_v18 = vmul.f32 %v4086_v44, %v83_v7  ;;  %v5479_v44 = vand.u32 4294901760, %v3984_v14 }
  0xab   :  { %3177 = vmatprep.mubr.f32.mxu0 %v5456_v54 }
  0xac   :  { %3122 = vmatmul.mubr.f32.gmra.mxu1 %v5458_v25  ;;  %191 = vadd.xlane.f32.xlu0 %v190_v13  ;;  %v5473_v13 = vand.u32 4294901760, %v5400_v32  ;;  %v208_v25 = vsel %vm123_vm0, %v119_v34, 0.0  ;;  %v5476_v32 = vand.u32 4294901760, %v5405_v41  ;;  %v2380_v41 = vld [vmem:[%s5220_s4 + $0x58] sm:$0xff] }
  0xad   :  { %3124 = vmatprep.mubr.f32.mxu1 %v5460_v58  ;;  %200 = vadd.xlane.f32.xlu1 %v199_v26  ;;  %v217_v58 = vsel %vm123_vm0, %v122_v18, 0.0  ;;  %v5478_v26 = vld [vmem:[#allocation49_spill] sm:$0xff] }
  0xae   :  { %3178 = vmatmul.mubr.f32.gmra.mxu0 %v5462_v42 }
  0xaf   :  { %3180 = vmatprep.mubr.f32.mxu0 %v5464_v1 }
  0xb0   :  { %3125 = vmatmul.mubr.f32.gmra.mxu1 %v5466_v11  ;;  %197 = vadd.xlane.f32.xlu0 %v196_v27 }
  0xb1   :  { %3127 = vmatprep.mubr.f32.mxu1 %v5468_v55  ;;  %206 = vadd.xlane.f32.xlu1 %v205_v5 }
  0xb2   :  { %3181 = vmatmul.mubr.f32.gmra.mxu0 %v5470_v59 }
  0xb3   :  { %3183 = vmatprep.mubr.f32.mxu0 %v5472_v36 }
  0xb4   :  { %3128 = vmatmul.mubr.f32.gmra.mxu1 %v5473_v13  ;;  %203 = vadd.xlane.f32.xlu0 %v202_v20  ;;  %v2375_v20 = vld [vmem:[%s5220_s4 + $0x30] sm:$0xff] }
  0xb5   :  { %3130 = vmatprep.mubr.f32.mxu1 %v5474_v9  ;;  %212 = vadd.xlane.f32.xlu1 %v211_v51 }
  0xb6   :  { %3184 = vmatmul.mubr.f32.gmra.mxu0 %v5475_v35 }
  0xb7   :  { %3186 = vmatprep.mubr.f32.mxu0 %v5399_v48 }
  0xb8   :  { %3131 = vmatmul.mubr.f32.gmra.mxu1 %v5476_v32  ;;  %209 = vadd.xlane.f32.xlu0 %v208_v25 }
  0xb9   :  { %3133 = vmatprep.mubr.f32.mxu1 %v5477_v8  ;;  %218 = vadd.xlane.f32.xlu1 %v217_v58 }
  0xba   :  { %3187 = vmatmul.mubr.f32.gmra.mxu0 %v5478_v26 }
  0xbb   :  { %3189 = vmatprep.mubr.f32.mxu0 %v5404_v53 }
  0xbc   :  { %3134 = vmatmul.mubr.f32.gmra.mxu1 %v5479_v44  ;;  %215 = vadd.xlane.f32.xlu0 %v214_v33 }
  0xbd   :  { %3200 = vmatprep.mubr.f32.mxu1 %v3511_v21 }
  0xbe   :  { %3190 = vmatmul.mubr.f32.gmra.mxu0 %v5406_v6 }
  0xc0   :  { %3201 = vmatmul.mubr.f32.vlgmr.msra.gmra.mxu1 %v3530_v28 }
  0xc1   :  { %3203 = vmatprep.mubr.f32.mxu1 %v3561_v40 }
  0xc4   :  { %3204 = vmatmul.mubr.f32.gmra.mxu1 %v3615_v62 }
  0xc5   :  { %3206 = vmatprep.mubr.f32.mxu1 %v3650_v43 }
  0xc8   :  { %3207 = vmatmul.mubr.f32.gmra.mxu1 %v3671_v63 }
  0xc9   :  { %3209 = vmatprep.mubr.f32.mxu1 %v3721_v24 }
  0xcc   :  { %3210 = vmatmul.mubr.f32.gmra.mxu1 %v3728_v50 }
  0xcd   :  { %3212 = vmatprep.mubr.f32.mxu1 %v3800_v57 }
  0xd0   :  { %3213 = vmatmul.mubr.f32.gmra.mxu1 %v3802_v60  ;;  %v4340_v21 = vpop.f32.mrf.mxu1 }
  0xd1   :  { %3215 = vmatprep.mubr.f32.mxu1 %v3847_v2  ;;  %v4342_v28 = vpop.f32.mrf.mxu0 }
  0xd2   :  { %v4344_v40 = vpop.f32.mrf.mxu1 }
  0xd3   :  { %v4350_v24 = vpop.f32.mrf.mxu0 }
  0xd4   :  { %3216 = vmatmul.mubr.f32.gmra.mxu1 %v3867_v10  ;;  %v4348_v62 = vpop.f32.mrf.mxu1 }
  0xd5   :  { %3218 = vmatprep.mubr.f32.mxu1 %v3926_v56  ;;  %v2384_v56 = vld [vmem:[%s5220_s4 + $0x78] sm:$0xff] }
  0xd6   :  { %v4354_v50 = vpop.f32.mrf.mxu1  ;;  %3248 = vmatprep.subr.mxu0 %v2384_v56 }
  0xd7   :  { %3249 = vmatpush3.msra.mxu0 %v2384_v56 }
  0xd8   :  { %3219 = vmatmul.mubr.f32.gmra.mxu1 %v3936_v61 }
  0xd9   :  { %3221 = vmatprep.mubr.f32.mxu1 %v3973_v37  ;;  %v4356_v60 = vpop.f32.mrf.mxu0 }
  0xdb   :  { %v4359_v43 = vpop.f32.mrf.mxu0 }
  0xdc   :  { %3222 = vmatmul.mubr.f32.gmra.mxu1 %v3986_v12  ;;  %v4362_v63 = vpop.f32.mrf.mxu1 }
  0xdd   :  { %3224 = vmatprep.mubr.f32.mxu1 %v3490_v15  ;;  %v4367_v57 = vpop.f32.mrf.mxu0  ;;  %v2383_v15 = vld [vmem:[%s5220_s4 + $0x70] sm:$0xff] }
  0xde   :  { %v4369_v61 = vpop.f32.mrf.mxu1  ;;  %3250 = vmatprep.subr.mxu0 %v2383_v15 }
  0xdf   :  { %v4373_v10 = vpop.f32.mrf.mxu0  ;;  %3251 = vmatpush3.msra.mxu0 %v2383_v15 }
  0xe0   :  { %3225 = vmatmul.mubr.f32.gmra.mxu1 %v3495_v17 }
  0xe1   :  { %3227 = vmatprep.mubr.f32.mxu1 %v3537_v30  ;;  %v4378_v2 = vpop.f32.mrf.mxu1  ;;  %v2382_v30 = vld [vmem:[%s5220_s4 + $0x68] sm:$0xff] }
  0xe2   :  { %3252 = vmatprep.subr.mxu0 %v2382_v30 }
  0xe3   :  { %v4384_v17 = vpop.f32.mrf.mxu1  ;;  %3253 = vmatpush3.msra.mxu0 %v2382_v30 }
  0xe4   :  { %3228 = vmatmul.mubr.f32.gmra.mxu1 %v3539_v31  ;;  %v2381_v31 = vld [vmem:[%s5220_s4 + $0x60] sm:$0xff] }
  0xe5   :  { %3230 = vmatprep.mubr.f32.mxu1 %v3624_v22  ;;  %v4382_v52 = vpop.f32.mrf.mxu0  ;;  %3254 = vmatprep.subr.mxu0 %v2381_v31 }
  0xe6   :  { %3255 = vmatpush3.msra.mxu0 %v2381_v31  ;;  %v2373_v31 = vld [vmem:[%s5220_s4 + $0x20] sm:$0xff] }
  0xe7   :  { %v4391_v37 = vpop.f32.mrf.mxu0  ;;  %3256 = vmatprep.subr.mxu0 %v2380_v41 }
  0xe8   :  { %3231 = vmatmul.mubr.f32.gmra.mxu1 %v5454_v3  ;;  %v4393_v14 = vpop.f32.mrf.mxu1  ;;  %3257 = vmatpush3.msra.mxu0 %v2380_v41 }
  0xe9   :  { %3233 = vmatprep.mubr.f32.mxu1 %v5456_v54  ;;  %3258 = vmatprep.subr.mxu0 %v2379_v19 }
  0xea   :  { %v4399_v22 = vpop.f32.mrf.mxu1  ;;  %3259 = vmatpush3.msra.mxu0 %v2379_v19 }
  0xeb   :  { %5480 = vst [vmem:[#allocation15_spill] sm:$0xff] %v4399_v22  ;;  %3260 = vmatprep.subr.mxu0 %v2378_v4 }
  0xec   :  { %3234 = vmatmul.mubr.f32.gmra.mxu1 %v5462_v42  ;;  %v4402_v12 = vpop.f32.mrf.mxu0  ;;  %3261 = vmatpush3.msra.mxu0 %v2378_v4 }
  0xed   :  { %3236 = vmatprep.mubr.f32.mxu1 %v5464_v1 }
  0xee   :  { %v4407_v3 = vpop.f32.mrf.mxu0  ;;  %v4410_v54 = vpop.f32.mrf.mxu1 }
  0xf0   :  { %3237 = vmatmul.mubr.f32.gmra.mxu1 %v5470_v59  ;;  %v4419_v42 = vpop.f32.mrf.mxu1 }
  0xf1   :  { %3239 = vmatprep.mubr.f32.mxu1 %v5472_v36 }
  0xf3   :  { %v4416_v47 = vpop.f32.mrf.mxu0 }
  0xf4   :  { %3240 = vmatmul.mubr.f32.gmra.mxu1 %v5475_v35 }
  0xf5   :  { %3242 = vmatprep.mubr.f32.mxu1 %v5399_v48  ;;  %v4422_v27 = vpop.f32.mrf.mxu0  ;;  %v2377_v48 = vld [vmem:[%s5220_s4 + $0x40] sm:$0xff] }
  0xf6   :  { %3262 = vmatprep.subr.mxu0 %v2377_v48 }
  0xf7   :  { %3263 = vmatpush3.msra.mxu0 %v2377_v48 }
  0xf8   :  { %v4427_v38 = vpop.f32.mrf.mxu1  ;;  %3243 = vmatmul.mubr.f32.gmra.mxu1 %v5478_v26  ;;  %3264 = vmatprep.subr.mxu0 %v2376_v16 }
  0xf9   :  { %v4430_v45 = vpop.f32.mrf.mxu0  ;;  %3245 = vmatprep.mubr.f32.mxu1 %v5404_v53  ;;  %3265 = vmatpush3.msra.mxu0 %v2376_v16 }
  0xfa   :  { %v4436_v1 = vpop.f32.mrf.mxu1  ;;  %3266 = vmatprep.subr.mxu0 %v2375_v20 }
  0xfb   :  { %v4438_v23 = vpop.f32.mrf.mxu0  ;;  %3267 = vmatpush3.msra.mxu0 %v2375_v20 }
  0xfc   :  { %v4440_v11 = vpop.f32.mrf.mxu1  ;;  %3246 = vmatmul.mubr.f32.gmra.mxu1 %v5406_v6 }
  0xfd   :  { %v4446_v55 = vpop.f32.mrf.mxu0 }
  0xfe   :  { %v4448_v53 = vpop.f32.mrf.mxu1 }
  0xff   :  { %v4450_v5 = vpop.f32.mrf.mxu0 }
 0x100   :  { %v2978_v39 = vpop.f32.mrf.mxu1 }
 0x101   :  { %v4453_v29 = vadd.f32 %v2978_v39, %v4342_v28 }
 0x102   :  { %v796_v7 = vpop.f32.mrf.mxu1  ;;  %v4455_v59 = vpop.f32.mrf.mxu0 }
 0x103   :  { %v4458_v6 = vadd.f32 %v796_v7, %v4350_v24 }
 0x104   :  { %v2981_v34 = vpop.f32.mrf.mxu1  ;;  %v4463_v0 = vpop.f32.mrf.mxu0 }
 0x105   :  { %v4466_v46 = vadd.f32 %v2981_v34, %v4356_v60 }
 0x106   :  { %v808_v36 = vpop.f32.mrf.mxu1  ;;  %v4468_v13 = vpop.f32.mrf.mxu0 }
 0x107   :  { %v4471_v9 = vadd.f32 %v808_v36, %v4359_v43  ;;  %v2374_v43 = vld [vmem:[%s5220_s4 + $0x28] sm:$0xff] }
 0x108   :  { %v2984_v51 = vpop.f32.mrf.mxu1  ;;  %v4473_v18 = vpop.f32.mrf.mxu0  ;;  %3268 = vmatprep.subr.mxu0 %v2374_v43 }
 0x109   :  { %v827_v35 = vadd.f32 %v2984_v51, %v4367_v57  ;;  %3269 = vmatpush3.msra.mxu0 %v2374_v43 }
 0x10a   :  { %v820_v25 = vpop.f32.mrf.mxu1  ;;  %v3040_v49 = vpop.f32.mrf.mxu0  ;;  %3270 = vmatprep.subr.mxu0 %v2373_v31 }
 0x10b   :  { %v4477_v32 = vadd.f32 %v820_v25, %v4373_v10  ;;  %v4479_v8 = vadd.f32 %v3040_v49, %v827_v35  ;;  %3271 = vmatpush3.msra.mxu0 %v2373_v31 }
 0x10c   :  { %v2987_v58 = vpop.f32.mrf.mxu1  ;;  %v4481_v26 = vpop.f32.mrf.mxu0 }
 0x10d   :  { %v839_v33 = vadd.f32 %v2987_v58, %v4382_v52 }
 0x10e   :  { %v832_v44 = vpop.f32.mrf.mxu1  ;;  %v3043_v28 = vpop.f32.mrf.mxu0 }
 0x10f   :  { %v4485_v24 = vadd.f32 %v832_v44, %v4391_v37  ;;  %v4487_v60 = vadd.f32 %v3043_v28, %v839_v33 }
 0x110   :  { %v2990_v56 = vpop.f32.mrf.mxu1  ;;  %v4492_v57 = vpop.f32.mrf.mxu0 }
 0x111   :  { %v851_v10 = vadd.f32 %v2990_v56, %v4402_v12 }
 0x112   :  { %v844_v15 = vpop.f32.mrf.mxu1  ;;  %v3046_v52 = vpop.f32.mrf.mxu0 }
 0x113   :  { %v4496_v30 = vadd.f32 %v844_v15, %v4407_v3  ;;  %v4498_v37 = vadd.f32 %v3046_v52, %v851_v10  ;;  %v2372_v3 = vld [vmem:[%s5220_s4 + $0x18] sm:$0xff] }
 0x114   :  { %v2993_v41 = vpop.f32.mrf.mxu1  ;;  %v4503_v19 = vpop.f32.mrf.mxu0  ;;  %3272 = vmatprep.subr.mxu0 %v2372_v3 }
 0x115   :  { %v863_v4 = vadd.f32 %v2993_v41, %v4416_v47  ;;  %3273 = vmatpush3.msra.mxu0 %v2372_v3  ;;  %v2371_v47 = vld [vmem:[%s5220_s4 + $0x10] sm:$0xff] }
 0x116   :  { %v856_v12 = vpop.f32.mrf.mxu1  ;;  %v3049_v48 = vpop.f32.mrf.mxu0  ;;  %3274 = vmatprep.subr.mxu0 %v2371_v47 }
 0x117   :  { %v4510_v16 = vadd.f32 %v856_v12, %v4422_v27  ;;  %v4512_v39 = vadd.f32 %v3049_v48, %v863_v4  ;;  %3275 = vmatpush3.msra.mxu0 %v2371_v47  ;;  %v2370_v27 = vld [vmem:[%s5220_s4 + $0x8] sm:$0xff]  ;;  %v4549_v48 = vpop.xlane.xlu1 %131 }
 0x118   :  { %v2996_v7 = vpop.f32.mrf.mxu1  ;;  %v4514_v20 = vpop.f32.mrf.mxu0  ;;  %3276 = vmatprep.subr.mxu0 %v2370_v27 }
 0x119   :  { %v875_v34 = vadd.f32 %v2996_v7, %v4430_v45  ;;  %3277 = vmatpush3.msra.mxu0 %v2370_v27  ;;  %v2369_v45 = vld [vmem:[%s5220_s4] sm:$0xff] }
 0x11a   :  { %v868_v36 = vpop.f32.mrf.mxu1  ;;  %v3052_v51 = vpop.f32.mrf.mxu0  ;;  %3278 = vmatprep.subr.mxu0 %v2369_v45 }
 0x11b   :  { %v4524_v35 = vadd.f32 %v868_v36, %v4438_v23  ;;  %v4526_v25 = vadd.f32 %v3052_v51, %v875_v34  ;;  %3279 = vmatpush3.msra.mxu0 %v2369_v45  ;;  %v4558_v36 = vpop.xlane.xlu0 %125 }
 0x11c   :  { %v2999_v49 = vpop.f32.mrf.mxu1  ;;  %v4528_v58 = vpop.f32.mrf.mxu0 }
 0x11d   :  { %v887_v33 = vadd.f32 %v2999_v49, %v4446_v55 }
 0x11e   :  { %v880_v44 = vpop.f32.mrf.mxu1  ;;  %v3055_v28 = vpop.f32.mrf.mxu0 }
 0x11f   :  { %v4535_v23 = vadd.f32 %v880_v44, %v4450_v5  ;;  %v4537_v43 = vadd.f32 %v3055_v28, %v887_v33 }
 0x120   :  { %v3002_v56 = vpop.f32.mrf.mxu1  ;;  %v4539_v10 = vpop.f32.mrf.mxu0 }
 0x121   :  { %v899_v15 = vadd.f32 %v3002_v56, %v4340_v21 }
 0x122   :  { %v4542_v52 = vpop.f32.mrf.mxu1  ;;  %v3058_v31 = vpop.f32.mrf.mxu0 }
 0x123   :  { %v4544_v41 = vadd.f32 %v3058_v31, %v899_v15 }
 0x124   :  { %v3005_v55 = vpop.f32.mrf.mxu1  ;;  %v4546_v4 = vpop.f32.mrf.mxu0 }
 0x125   :  { %5481 = vst [vmem:[#allocation18_spill] sm:$0xff] %v4546_v4  ;;  %v911_v12 = vadd.f32 %v3005_v55, %v4348_v62  ;;  %v4564_v62 = vpop.xlane.xlu1 %134 }
 0x126   :  { %v4551_v5 = vpop.f32.mrf.mxu1  ;;  %v3061_v3 = vpop.f32.mrf.mxu0 }
 0x127   :  { %v4553_v7 = vadd.f32 %v3061_v3, %v911_v12 }
 0x128   :  { %v3008_v47 = vpop.f32.mrf.mxu1  ;;  %v4555_v34 = vpop.f32.mrf.mxu0 }
 0x129   :  { %5482 = vst [vmem:[#allocation4_spill] sm:$0xff] %v4555_v34  ;;  %v923_v21 = vadd.f32 %v3008_v47, %v4362_v63  ;;  %v4573_v63 = vpop.xlane.xlu0 %128  ;;  %v4578_v3 = vpop.xlane.xlu1 %140 }
 0x12a   :  { %v4560_v51 = vpop.f32.mrf.mxu1  ;;  %v3064_v27 = vpop.f32.mrf.mxu0 }
 0x12b   :  { %v4562_v49 = vadd.f32 %v3064_v27, %v923_v21 }
 0x12c   :  { %v3011_v45 = vpop.f32.mrf.mxu1  ;;  %v4566_v33 = vpop.f32.mrf.mxu0 }
 0x12d   :  { %5483 = vst [vmem:[#allocation8_spill] sm:$0xff] %v4566_v33  ;;  %v935_v44 = vadd.f32 %v3011_v45, %v4378_v2  ;;  %v4584_v2 = vpop.xlane.xlu0 %137 }
 0x12e   :  { %v4569_v28 = vpop.f32.mrf.mxu1  ;;  %v3067_v56 = vpop.f32.mrf.mxu0 }
 0x12f   :  { %5484 = vst [vmem:[#allocation5_spill] sm:$0xff] %v4569_v28  ;;  %v4571_v15 = vadd.f32 %v3067_v56, %v935_v44 }
 0x130   :  { %v3014_v31 = vpop.f32.mrf.mxu1  ;;  %v4575_v55 = vpop.f32.mrf.mxu0 }
 0x131   :  { %5485 = vst [vmem:[#allocation42_spill] sm:$0xff] %v4575_v55  ;;  %v947_v12 = vadd.f32 %v3014_v31, %v4393_v14  ;;  %v4594_v31 = vpop.xlane.xlu1 %146 }
 0x132   :  { %v4580_v47 = vpop.f32.mrf.mxu1  ;;  %v3070_v21 = vpop.f32.mrf.mxu0 }
 0x133   :  { %5486 = vst [vmem:[#allocation41_spill] sm:$0xff] %v4580_v47  ;;  %v4582_v27 = vadd.f32 %v3070_v21, %v947_v12  ;;  %v4599_v21 = vpop.xlane.xlu0 %143 }
 0x134   :  { %v3017_v45 = vpop.f32.mrf.mxu1  ;;  %v4586_v33 = vpop.f32.mrf.mxu0 }
 0x135   :  { %5487 = vst [vmem:[#allocation45_spill] sm:$0xff] %v4586_v33  ;;  %v959_v44 = vadd.f32 %v3017_v45, %v4410_v54 }
 0x136   :  { %v952_v56 = vpop.f32.mrf.mxu1  ;;  %v3073_v34 = vpop.f32.mrf.mxu0 }
 0x137   :  { %v4590_v55 = vadd.f32 %v952_v56, %v4419_v42  ;;  %v4592_v14 = vadd.f32 %v3073_v34, %v959_v44  ;;  %v4609_v44 = vpop.xlane.xlu1 %152  ;;  %v4616_v28 = vpop.xlane.xlu0 %149 }
 0x138   :  { %v3020_v47 = vpop.f32.mrf.mxu1  ;;  %v4596_v22 = vpop.f32.mrf.mxu0 }
 0x139   :  { %5488 = vst [vmem:[#allocation9_spill] sm:$0xff] %v4590_v55  ;;  %5489 = vst [vmem:[#allocation53_spill] sm:$0xff] %v4596_v22  ;;  %v971_v12 = vadd.f32 %v3020_v47, %v4427_v38 }
 0x13a   :  { %v964_v4 = vpop.f32.mrf.mxu1  ;;  %v3076_v33 = vpop.f32.mrf.mxu0 }
 0x13b   :  { %v4602_v54 = vadd.f32 %v964_v4, %v4436_v1  ;;  %v4604_v45 = vadd.f32 %v3076_v33, %v971_v12 }
 0x13c   :  { %v3023_v42 = vpop.f32.mrf.mxu1  ;;  %v4606_v56 = vpop.f32.mrf.mxu0 }
 0x13d   :  { %5490 = vst [vmem:[#allocation51_spill] sm:$0xff] %v4602_v54  ;;  %5491 = vst [vmem:[#allocation54_spill] sm:$0xff] %v4606_v56  ;;  %v983_v34 = vadd.f32 %v3023_v42, %v4440_v11  ;;  %v4626_v11 = vpop.xlane.xlu1 %158 }
 0x13e   :  { %v976_v55 = vpop.f32.mrf.mxu1  ;;  %v3079_v22 = vpop.f32.mrf.mxu0 }
 0x13f   :  { %v4612_v38 = vadd.f32 %v976_v55, %v4448_v53  ;;  %v4614_v47 = vadd.f32 %v3079_v22, %v983_v34  ;;  %v4632_v53 = vpop.xlane.xlu0 %155 }
 0x140   :  { %v4618_v1 = vpop.f32.mrf.mxu0  ;;  %v4620_v4 = vpop.f32.mrf.mxu1 }
 0x141   :  { %5492 = vst [vmem:[#allocation13_spill] sm:$0xff] %v4612_v38  ;;  %5493 = vst [vmem:[#allocation12_spill] sm:$0xff] %v4614_v47 }
 0x142   :  { %5494 = vst [vmem:[#allocation21_spill] sm:$0xff] %v4618_v1  ;;  %5495 = vst [vmem:[#allocation19_spill] sm:$0xff] %v4620_v4  ;;  %v4622_v33 = vpop.f32.mrf.mxu1  ;;  %v4624_v12 = vpop.f32.mrf.mxu0 }
 0x143   :  { %5496 = vst [vmem:[#allocation29_spill] sm:$0xff] %v4622_v33  ;;  %5497 = vst [vmem:[#allocation28_spill] sm:$0xff] %v4624_v12  ;;  %v4645_v12 = vpop.xlane.xlu1 %164  ;;  %v4647_v47 = vpop.xlane.xlu0 %161 }
 0x144   :  { %v4628_v42 = vpop.f32.mrf.mxu1  ;;  %v4630_v56 = vpop.f32.mrf.mxu0  ;;  %5505 = vst [vmem:[#allocation2_spill] sm:$0xff] %v4647_v47 }
 0x145   :  { %5498 = vst [vmem:[#allocation37_spill] sm:$0xff] %v4628_v42  ;;  %5499 = vst [vmem:[#allocation35_spill] sm:$0xff] %v4630_v56 }
 0x146   :  { %v4634_v22 = vpop.f32.mrf.mxu1  ;;  %v4636_v55 = vpop.f32.mrf.mxu0 }
 0x147   :  { %5500 = vst [vmem:[#allocation46_spill] sm:$0xff] %v4634_v22  ;;  %5501 = vst [vmem:[#allocation44_spill] sm:$0xff] %v4636_v55  ;;  %v4656_v4 = vpop.xlane.xlu1 %170 }
 0x148   :  { %v3096_v34 = vpop.f32.mrf.mxu1  ;;  %v4641_v38 = vpop.f32.mrf.mxu0 }
 0x149   :  { %v4639_v1 = vadd.f32 %v3096_v34, %v4479_v8  ;;  %5503 = vst [vmem:[#allocation50_spill] sm:$0xff] %v4641_v38 }
 0x14a   :  { %v4643_v54 = vpop.f32.mrf.mxu1  ;;  %v4649_v56 = vpop.f32.mrf.mxu0 }
 0x14b   :  { %5502 = vst [vmem:[#allocation52_spill] sm:$0xff] %v4639_v1  ;;  %5504 = vst [vmem:[#allocation3_spill] sm:$0xff] %v4643_v54  ;;  %v4663_v1 = vpop.xlane.xlu0 %167 }
 0x14c   :  { %v3099_v42 = vpop.f32.mrf.mxu1  ;;  %5506 = vst [vmem:[#allocation7_spill] sm:$0xff] %v4649_v56  ;;  %v4658_v8 = vpop.f32.mrf.mxu0 }
 0x14d   :  { %v4652_v33 = vadd.f32 %v3099_v42, %v4487_v60  ;;  %5509 = vst [vmem:[#allocation10_spill] sm:$0xff] %v4658_v8 }
 0x14e   :  { %v4654_v22 = vpop.f32.mrf.mxu1  ;;  %v4667_v47 = vpop.f32.mrf.mxu0 }
 0x14f   :  { %5507 = vst [vmem:[#allocation6_spill] sm:$0xff] %v4652_v33  ;;  %5508 = vst [vmem:[#allocation11_spill] sm:$0xff] %v4654_v22  ;;  %v4674_v33 = vpop.xlane.xlu1 %176  ;;  %v4676_v56 = vpop.xlane.xlu0 %173 }
 0x150   :  { %v3102_v55 = vpop.f32.mrf.mxu1  ;;  %5512 = vst [vmem:[#allocation26_spill] sm:$0xff] %v4667_v47  ;;  %5515 = vst [vmem:[#allocation34_spill] sm:$0xff] %v4676_v56  ;;  %v4678_v22 = vpop.f32.mrf.mxu0 }
 0x151   :  { %v4661_v34 = vadd.f32 %v3102_v55, %v4498_v37  ;;  %5516 = vst [vmem:[#allocation16_spill] sm:$0xff] %v4678_v22 }
 0x152   :  { %v4665_v38 = vpop.f32.mrf.mxu1  ;;  %v4687_v47 = vpop.f32.mrf.mxu0 }
 0x153   :  { %5510 = vst [vmem:[#allocation17_spill] sm:$0xff] %v4661_v34  ;;  %5511 = vst [vmem:[#allocation14_spill] sm:$0xff] %v4665_v38  ;;  %v4685_v38 = vpop.xlane.xlu1 %182 }
 0x154   :  { %v3105_v54 = vpop.f32.mrf.mxu1  ;;  %5519 = vst [vmem:[#allocation25_spill] sm:$0xff] %v4687_v47  ;;  %v4696_v56 = vpop.f32.mrf.mxu0 }
 0x155   :  { %v4670_v60 = vadd.f32 %v3105_v54, %v4512_v39  ;;  %v4692_v54 = vpop.xlane.xlu0 %179  ;;  %5522 = vst [vmem:[#allocation23_spill] sm:$0xff] %v4696_v56 }
 0x156   :  { %v4672_v42 = vpop.f32.mrf.mxu1  ;;  %v4707_v22 = vpop.f32.mrf.mxu0 }
 0x157   :  { %5513 = vst [vmem:[#allocation24_spill] sm:$0xff] %v4670_v60  ;;  %5514 = vst [vmem:[#allocation22_spill] sm:$0xff] %v4672_v42 }
 0x158   :  { %v3108_v8 = vpop.f32.mrf.mxu1  ;;  %v4716_v56 = vpop.f32.mrf.mxu0 }
 0x159   :  { %v4681_v37 = vadd.f32 %v3108_v8, %v4526_v25  ;;  %5528 = vst [vmem:[#allocation31_spill] sm:$0xff] %v4716_v56 }
 0x15a   :  { %v4683_v55 = vpop.f32.mrf.mxu1 }
 0x15b   :  { %5517 = vst [vmem:[#allocation32_spill] sm:$0xff] %v4681_v37  ;;  %5518 = vst [vmem:[#allocation20_spill] sm:$0xff] %v4683_v55  ;;  %v4703_v37 = vpop.xlane.xlu1 %188  ;;  %v4705_v55 = vpop.xlane.xlu0 %185 }
 0x15c   :  { %v3111_v34 = vpop.f32.mrf.mxu1  ;;  %5525 = vst [vmem:[#allocation33_spill] sm:$0xff] %v4705_v55  ;;  %v4725_v55 = vpop.f32.mrf.mxu0 }
 0x15d   :  { %v4690_v39 = vadd.f32 %v3111_v34, %v4537_v43 }
 0x15e   :  { %v4694_v60 = vpop.f32.mrf.mxu1 }
 0x15f   :  { %5520 = vst [vmem:[#allocation30_spill] sm:$0xff] %v4690_v39  ;;  %5521 = vst [vmem:[#allocation43_spill] sm:$0xff] %v4694_v60  ;;  %v4714_v60 = vpop.xlane.xlu1 %194 }
 0x160   :  { %v3114_v42 = vpop.f32.mrf.mxu1 }
 0x161   :  { %v4699_v25 = vadd.f32 %v3114_v42, %v4544_v41  ;;  %v4721_v42 = vpop.xlane.xlu0 %191 }
 0x162   :  { %v4701_v8 = vpop.f32.mrf.mxu1 }
 0x163   :  { %5523 = vst [vmem:[#allocation38_spill] sm:$0xff] %v4699_v25  ;;  %5524 = vst [vmem:[#allocation27_spill] sm:$0xff] %v4701_v8 }
 0x164   :  { %v3117_v47 = vpop.f32.mrf.mxu1 }
 0x165   :  { %v4710_v43 = vadd.f32 %v3117_v47, %v4553_v7 }
 0x166   :  { %v4712_v34 = vpop.f32.mrf.mxu1 }
 0x167   :  { %5526 = vst [vmem:[#allocation40_spill] sm:$0xff] %v4710_v43  ;;  %5527 = vst [vmem:[#allocation48_spill] sm:$0xff] %v4712_v34  ;;  %v4732_v43 = vpop.xlane.xlu1 %200  ;;  %v4734_v34 = vpop.xlane.xlu0 %197 }
 0x168   :  { %v3120_v39 = vpop.f32.mrf.mxu1 }
 0x169   :  { %v4719_v41 = vadd.f32 %v3120_v39, %v4562_v49  ;;  %v4739_v49 = vld [vmem:[%s5221_s3] ss:$0 sm:$0xff]  ;;  %v4741_v39 = vpop.f32.mrf.mxu0 }
 0x16a   :  { %v4723_v25 = vpop.f32.mrf.mxu1 }
 0x16b   :  { %5529 = vst [vmem:[#allocation47_spill] sm:$0xff] %v4719_v41  ;;  %5530 = vst [vmem:[#allocation36_spill] sm:$0xff] %v4723_v25 }
 0x16c   :  { %v3123_v8 = vpop.f32.mrf.mxu1 }
 0x16d   :  { %v4728_v7 = vadd.f32 %v3123_v8, %v4571_v15  ;;  %v1070_v15 = vadd.f32 %v4455_v59, %v4453_v29  ;;  %v4752_v8 = vadd.f32 %v4739_v49, %v4558_v36  ;;  %v1077_v29 = vadd.f32 %v4473_v18, %v4471_v9  ;;  %v204_v9 = vpop.xlane.xlu0 %203 }
 0x16e   :  { %v4730_v47 = vpop.f32.mrf.mxu1  ;;  %v4770_v36 = vadd.f32 %v4739_v49, %v4564_v62  ;;  %v4793_v18 = vadd.f32 %v4503_v19, %v4496_v30  ;;  %v4809_v62 = vadd.f32 %v4514_v20, %v4510_v16  ;;  %v905_v30 = vadd.f32 %v4551_v5, %v4354_v50 }
 0x16f   :  { %5531 = vst [vmem:[#allocation39_spill] sm:$0xff] %v4728_v7  ;;  %5532 = vst [vmem:[#allocation49_spill] sm:$0xff] %v4730_v47  ;;  %v4756_v7 = vadd.f32 %v4739_v49, %v4549_v48  ;;  %v4760_v47 = vadd.f32 %v4739_v49, %v4573_v63  ;;  %v4772_v48 = vpop.xlane.xlu1 %206  ;;  %v4776_v63 = vadd.f32 %v4481_v26, %v4477_v32 }
 0x170   :  { %v3126_v56 = vpop.f32.mrf.mxu1  ;;  %v893_v32 = vadd.f32 %v4542_v52, %v4344_v40  ;;  %v4815_v40 = vadd.f32 %v4739_v49, %v4599_v21  ;;  %v4819_v19 = vadd.f32 %v4739_v49, %v4609_v44  ;;  %v4823_v52 = vadd.f32 %v4528_v58, %v4524_v35  ;;  %v5540_v21 = vld [vmem:[#allocation41_spill] sm:$0xff] }
 0x171   :  { %v4744_v41 = vadd.f32 %v3126_v56, %v4582_v27  ;;  %v1063_v27 = vadd.f32 %v4463_v0, %v4458_v6  ;;  %v1084_v56 = vadd.f32 %v4468_v13, %v4466_v46  ;;  %v4780_v6 = vadd.f32 %v4492_v57, %v4485_v24  ;;  %v4782_v0 = vpop.f32.mrf.mxu0 }
 0x172   :  { %v4746_v25 = vpop.f32.mrf.mxu1  ;;  %v4789_v13 = vadd.f32 %v4739_v49, %v4578_v3  ;;  %v4801_v24 = vadd.f32 %v4739_v49, %v4584_v2  ;;  %v4805_v57 = vadd.f32 %v4739_v49, %v4594_v31  ;;  %v917_v3 = vadd.f32 %v4560_v51, %v4369_v61  ;;  %v5536_v2 = vld [vmem:[#allocation5_spill] sm:$0xff]  ;;  %v5539_v31 = vld [vmem:[#allocation15_spill] sm:$0xff] }
 0x173   :  { %5533 = vst [vmem:[#allocation55_spill] sm:$0xff] %v4744_v41  ;;  %v4829_v20 = vadd.f32 %v4739_v49, %v4616_v28  ;;  %v4833_v50 = vadd.f32 %v4739_v49, %v4626_v11  ;;  %v4837_v5 = vadd.f32 %v4539_v10, %v4535_v23  ;;  %v929_v35 = vadd.f32 %v5536_v2, %v4384_v17  ;;  %v4841_v58 = vpop.f32.mrf.mxu0  ;;  %v5538_v28 = vld [vmem:[#allocation18_spill] sm:$0xff]  ;;  %v213_v11 = vpop.xlane.xlu1 %212 }
 0x174   :  { %v3129_v59 = vpop.f32.mrf.mxu1  ;;  %v4848_v51 = vadd.f32 %v4739_v49, %v4632_v53  ;;  %v941_v44 = vadd.f32 %v5540_v21, %v5539_v31  ;;  %v4859_v17 = vadd.f32 %v4739_v49, %v4645_v12  ;;  %v5542_v10 = vld [vmem:[#allocation2_spill] sm:$0xff]  ;;  %v4871_v2 = vadd.f32 %v4739_v49, %v4656_v4  ;;  %v210_v12 = vpop.xlane.xlu0 %209  ;;  %v5545_v31 = vld [vmem:[#allocation8_spill] sm:$0xff] }
 0x175   :  { %v4785_v46 = vadd.f32 %v3129_v59, %v4592_v14  ;;  %v4851_v14 = vadd.f32 %v5538_v28, %v893_v32  ;;  %v5543_v59 = vld [vmem:[#allocation4_spill] sm:$0xff]  ;;  %v4875_v28 = vadd.f32 %v4739_v49, %v4663_v1  ;;  %v4878_v21 = vadd.f32 %v5545_v31, %v917_v3  ;;  %v4896_v3 = vpop.f32.mrf.mxu0 }
 0x176   :  { %v4797_v26 = vpop.f32.mrf.mxu1  ;;  %v4866_v53 = vadd.f32 %v5543_v59, %v905_v30  ;;  %v5546_v30 = vld [vmem:[#allocation34_spill] sm:$0xff]  ;;  %v4890_v4 = vadd.f32 %v4739_v49, %v4685_v38  ;;  %v5549_v31 = vld [vmem:[#allocation12_spill] sm:$0xff]  ;;  %v4912_v38 = vadd.f32 %v4739_v49, %v4703_v37  ;;  %v4930_v37 = vadd.f32 %v4739_v49, %v4721_v42 }
 0x177   :  { %5534 = vst [vmem:[#allocation56_spill] sm:$0xff] %v4785_v46  ;;  %5535 = vst [vmem:[#allocation57_spill] sm:$0xff] %v4797_v26  ;;  %v5547_v59 = vld [vmem:[#allocation42_spill] sm:$0xff]  ;;  %v4946_v42 = vpop.f32.mrf.mxu0 }
 0x178   :  { %v3132_v16 = vpop.f32.mrf.mxu1  ;;  %v4893_v1 = vadd.f32 %v5547_v59, %v929_v35  ;;  %5554 = vst [vmem:[#allocation4_spill] sm:$0xff] %v4912_v38  ;;  %v5555_v35 = vld [vmem:[#allocation33_spill] sm:$0xff]  ;;  %5562 = vst [vmem:[#allocation34_spill] sm:$0xff] %v4930_v37  ;;  %v5564_v38 = vld [vmem:[#allocation54_spill] sm:$0xff] }
 0x179   :  { %v4844_v61 = vadd.f32 %v3132_v16, %v4604_v45  ;;  %v4863_v45 = vadd.f32 %v4739_v49, %v5542_v10  ;;  %v5544_v16 = vld [vmem:[#allocation19_spill] sm:$0xff]  ;;  %v5558_v59 = vld [vmem:[#allocation9_spill] sm:$0xff]  ;;  %v5580_v37 = vld [vmem:[#allocation50_spill] sm:$0xff] }
 0x17a   :  { %v4855_v23 = vpop.f32.mrf.mxu1  ;;  %v1365_v32 = vadd.f32 %v5544_v16, %v1070_v15  ;;  %v4886_v15 = vadd.f32 %v4739_v49, %v5546_v30  ;;  %v5548_v16 = vld [vmem:[#allocation29_spill] sm:$0xff] }
 0x17b   :  { %5537 = vst [vmem:[#allocation5_spill] sm:$0xff] %v4844_v61  ;;  %5541 = vst [vmem:[#allocation18_spill] sm:$0xff] %v4855_v23  ;;  %v4882_v61 = vadd.f32 %v4739_v49, %v4674_v33  ;;  %v1357_v23 = vadd.f32 %v5548_v16, %v1063_v27  ;;  %v4903_v33 = vadd.f32 %v4739_v49, %v4692_v54  ;;  %v5552_v30 = vld [vmem:[#allocation45_spill] sm:$0xff] }
 0x17c   :  { %v3135_v10 = vpop.f32.mrf.mxu1  ;;  %v4906_v26 = vadd.f32 %v5552_v30, %v941_v44  ;;  %v4916_v27 = vadd.f32 %v4739_v49, %v5555_v35  ;;  %v5559_v54 = vld [vmem:[#allocation53_spill] sm:$0xff]  ;;  %v5560_v44 = vld [vmem:[#allocation28_spill] sm:$0xff] }
 0x17d   :  { %v4899_v46 = vadd.f32 %v3135_v10, %v5549_v31  ;;  %5551 = vst [vmem:[#allocation41_spill] sm:$0xff] %v4903_v33  ;;  %v4920_v10 = vadd.f32 %v4739_v49, %v4714_v60  ;;  %v4924_v16 = vadd.f32 %v5559_v54, %v5558_v59  ;;  %v1694_v31 = vadd.f32 %v5560_v44, %v1365_v32  ;;  %v5561_v30 = vld [vmem:[#allocation37_spill] sm:$0xff]  ;;  %v5569_v59 = vld [vmem:[#allocation35_spill] sm:$0xff] }
 0x17e   :  { %v4908_v41 = vpop.f32.mrf.mxu1  ;;  %5556 = vst [vmem:[#allocation19_spill] sm:$0xff] %v4916_v27  ;;  %v5566_v27 = vld [vmem:[#allocation46_spill] sm:$0xff]  ;;  %v4943_v32 = vadd.f32 %v4739_v49, %v4734_v34  ;;  %v1688_v54 = vadd.f32 %v5569_v59, %v1357_v23  ;;  %v5575_v34 = vld [vmem:[#allocation3_spill] sm:$0xff] }
 0x17f   :  { %5550 = vst [vmem:[#allocation15_spill] sm:$0xff] %v4899_v46  ;;  %5553 = vst [vmem:[#allocation2_spill] sm:$0xff] %v4908_v41  ;;  %v1381_v46 = vadd.f32 %v5561_v30, %v1084_v56  ;;  %v5563_v41 = vld [vmem:[#allocation51_spill] sm:$0xff]  ;;  %v1373_v33 = vadd.f32 %v5566_v27, %v1077_v29  ;;  %v219_v56 = vpop.xlane.xlu1 %218  ;;  %v4953_v29 = vadd.f32 %v4739_v49, %v204_v9  ;;  %v5573_v27 = vld [vmem:[#allocation21_spill] sm:$0xff] }
 0x180   :  { %5557 = vst [vmem:[#allocation8_spill] sm:$0xff] %v4920_v10  ;;  %v4934_v35 = vadd.f32 %v5564_v38, %v5563_v41  ;;  %v3202_v60 = vpop.f32.mrf.mxu1  ;;  %v4939_v10 = vadd.f32 %v4739_v49, %v4732_v43  ;;  %5568 = vst [vmem:[#allocation12_spill] sm:$0xff] %v4943_v32  ;;  %v4950_v41 = vadd.f32 %v4739_v49, %v4772_v48  ;;  %v216_v38 = vpop.xlane.xlu0 %215  ;;  %v5572_v43 = vld [vmem:[#allocation13_spill] sm:$0xff]  ;;  %v5576_v23 = vld [vmem:[#allocation11_spill] sm:$0xff] }
 0x181   :  { %v1955_v44 = vadd.f32 %v3202_v60, %v1694_v31  ;;  %5571 = vst [vmem:[#allocation33_spill] sm:$0xff] %v4953_v29  ;;  %v4957_v30 = vadd.f32 %v5573_v27, %v5572_v43  ;;  %v1389_v32 = vadd.f32 %v5575_v34, %v4776_v63  ;;  %v1405_v59 = vadd.f32 %v5576_v23, %v4780_v6  ;;  %v5578_v48 = vld [vmem:[#allocation44_spill] sm:$0xff]  ;;  %v5581_v27 = vld [vmem:[#allocation14_spill] sm:$0xff]  ;;  %v5585_v23 = vld [vmem:[#allocation7_spill] sm:$0xff] }
 0x182   :  { %5565 = vst [vmem:[#allocation42_spill] sm:$0xff] %v4934_v35  ;;  %5567 = vst [vmem:[#allocation29_spill] sm:$0xff] %v4939_v10  ;;  %v1948_v10 = vpop.f32.mrf.mxu1  ;;  %v4964_v31 = vadd.f32 %v4739_v49, %v213_v11  ;;  %v1706_v60 = vadd.f32 %v5578_v48, %v1381_v46  ;;  %v4968_v29 = vadd.f32 %v4739_v49, %v210_v12  ;;  %v5584_v11 = vld [vmem:[#allocation52_spill] sm:$0xff]  ;;  %v5587_v48 = vld [vmem:[#allocation6_spill] sm:$0xff] }
 0x183   :  { %5570 = vst [vmem:[#allocation45_spill] sm:$0xff] %v4950_v41  ;;  %5574 = vst [vmem:[#allocation9_spill] sm:$0xff] %v4957_v30  ;;  %v2178_v41 = vmul.f32 2.0, %v1955_v44  ;;  %v1949_v9 = vadd.f32 %v1948_v10, %v1688_v54  ;;  %v1700_v43 = vadd.f32 %v5580_v37, %v1373_v33  ;;  %v1421_v30 = vadd.f32 %v5581_v27, %v4793_v18  ;;  %v4981_v44 = vpop.f32.mrf.mxu0  ;;  %v5586_v33 = vld [vmem:[#allocation10_spill] sm:$0xff]  ;;  %v5592_v35 = vld [vmem:[#allocation25_spill] sm:$0xff] }
 0x184   :  { %5577 = vst [vmem:[#allocation53_spill] sm:$0xff] %v4964_v31  ;;  %5579 = vst [vmem:[#allocation28_spill] sm:$0xff] %v4968_v29  ;;  %v3205_v63 = vpop.f32.mrf.mxu1  ;;  %v4974_v34 = vadd.f32 %v4739_v49, %v219_v56  ;;  %v4977_v6 = vadd.f32 %v4739_v49, %v216_v38  ;;  %v1718_v46 = vadd.f32 %v5585_v23, %v5584_v11  ;;  %v5588_v18 = vld [vmem:[#allocation26_spill] sm:$0xff]  ;;  %v5589_v29 = vld [vmem:[#allocation16_spill] sm:$0xff] }
 0x185   :  { %v2177_v10 = vmul.f32 2.0, %v1949_v9  ;;  %v2210_v12 = vsub.f32 %v4760_v47, %v2178_v41  ;;  %v1967_v54 = vadd.f32 %v3205_v63, %v1706_v60  ;;  %v1712_v37 = vadd.f32 %v5586_v33, %v1389_v32  ;;  %v5591_v9 = vld [vmem:[#allocation17_spill] sm:$0xff]  ;;  %v5593_v41 = vld [vmem:[#allocation23_spill] sm:$0xff]  ;;  %v5594_v32 = vld [vmem:[#allocation24_spill] sm:$0xff] }
 0x186   :  { %5582 = vst [vmem:[#allocation37_spill] sm:$0xff] %v4974_v34  ;;  %5583 = vst [vmem:[#allocation51_spill] sm:$0xff] %v4977_v6  ;;  %v1730_v27 = vadd.f32 %v5588_v18, %v5587_v48  ;;  %v1724_v56 = vadd.f32 %v5589_v29, %v1405_v59  ;;  %v5590_v34 = vld [vmem:[#allocation22_spill] sm:$0xff]  ;;  %v1960_v38 = vpop.f32.mrf.mxu1  ;;  %v1742_v47 = vadd.f32 %v5592_v35, %v5591_v9  ;;  %v5595_v29 = vld [vmem:[#allocation20_spill] sm:$0xff] }
 0x187   :  { %v1437_v49 = vadd.f32 %v5590_v34, %v4809_v62  ;;  %v2209_v6 = vsub.f32 %v4752_v8, %v2177_v10  ;;  %v2242_v11 = vmax.f32 %v2210_v12, 0.0  ;;  %v2180_v23 = vmul.f32 2.0, %v1967_v54  ;;  %v5000_v62 = vpop.f32.mrf.mxu0  ;;  %v5596_v12 = vld [vmem:[#allocation31_spill] sm:$0xff]  ;;  %v5597_v35 = vld [vmem:[#allocation32_spill] sm:$0xff] }
 0x188   :  { %v1961_v31 = vadd.f32 %v1960_v38, %v1700_v43  ;;  %v1736_v60 = vadd.f32 %v5593_v41, %v1421_v30  ;;  %v4996_v63 = vadd.f32 %v4707_v22, %v5594_v32  ;;  %v1453_v59 = vadd.f32 %v5595_v29, %v4823_v52  ;;  %v3208_v33 = vpop.f32.mrf.mxu1  ;;  %v5598_v22 = vld [vmem:[#allocation43_spill] sm:$0xff] }
 0x189   :  { %v2241_v34 = vmax.f32 %v2209_v6, 0.0  ;;  %v2274_v8 = vsub.f32 0.0, %v2242_v11  ;;  %v2212_v10 = vsub.f32 %v4770_v36, %v2180_v23  ;;  %v5004_v54 = vadd.f32 %v5596_v12, %v1437_v49  ;;  %v5600_v32 = vld [vmem:[#allocation27_spill] sm:$0xff] }
 0x18a   :  { %v2179_v43 = vmul.f32 2.0, %v1961_v31  ;;  %v5008_v30 = vadd.f32 %v4725_v55, %v5597_v35  ;;  %v1469_v48 = vadd.f32 %v5598_v22, %v4837_v5  ;;  %v1979_v18 = vadd.f32 %v3208_v33, %v1718_v46  ;;  %v1972_v52 = vpop.f32.mrf.mxu1  ;;  %v5599_v31 = vld [vmem:[#allocation30_spill] sm:$0xff]  ;;  %v5022_v46 = vpop.f32.mrf.mxu0 }
 0x18b   :  { %v2273_v38 = vsub.f32 0.0, %v2241_v34  ;;  %v2307_v9 = vmul.f32 1.442695, %v2274_v8  ;;  %v2244_v41 = vmax.f32 %v2212_v10, 0.0  ;;  %v5014_v36 = vadd.f32 %v4741_v39, %v1453_v59 }
 0x18c   :  { %v2211_v6 = vsub.f32 %v4756_v7, %v2179_v43  ;;  %v5018_v49 = vadd.f32 %v4782_v0, %v5599_v31  ;;  %v2182_v11 = vmul.f32 2.0, %v1979_v18  ;;  %v1973_v55 = vadd.f32 %v1972_v52, %v1712_v37  ;;  %v3211_v23 = vpop.f32.mrf.mxu1  ;;  %v5601_v18 = vld [vmem:[#allocation38_spill] sm:$0xff] }
 0x18d   :  { %v1485_v5 = vadd.f32 %v5600_v32, %v4851_v14  ;;  %v2305_v29 = vmul.f32 1.442695, %v2273_v38  ;;  %v2276_v33 = vsub.f32 0.0, %v2244_v41  ;;  %3336 = vpow2.f32 %v2307_v9 }
 0x18e   :  { %v2243_v34 = vmax.f32 %v2211_v6, 0.0  ;;  %v2214_v7 = vsub.f32 %v4789_v13, %v2182_v11  ;;  %v2181_v39 = vmul.f32 2.0, %v1973_v55  ;;  %v1991_v59 = vadd.f32 %v3211_v23, %v1730_v27  ;;  %v1984_v8 = vpop.f32.mrf.mxu1  ;;  %v5033_v13 = vpop.f32.mrf.mxu0 }
 0x18f   :  { %v5026_v0 = vadd.f32 %v4841_v58, %v1469_v48  ;;  %3338 = vpow2.f32 %v2305_v29  ;;  %v1985_v10 = vadd.f32 %v1984_v8, %v1724_v56  ;;  %v2311_v43 = vmul.f32 1.442695, %v2276_v33 }
 0x190   :  { %v2275_v37 = vsub.f32 0.0, %v2243_v34  ;;  %v2246_v12 = vmax.f32 %v2214_v7, 0.0  ;;  %v2184_v14 = vmul.f32 2.0, %v1991_v59  ;;  %v2213_v35 = vsub.f32 %v4801_v24, %v2181_v39  ;;  %v3214_v22 = vpop.f32.mrf.mxu1  ;;  %v5040_v29 = vpop.f32.mrf.mxu0 }
 0x191   :  { %v5031_v52 = vadd.f32 %v4896_v3, %v5601_v18  ;;  %v2183_v38 = vmul.f32 2.0, %v1985_v10  ;;  %v2003_v9 = vadd.f32 %v3214_v22, %v1742_v47  ;;  %v5036_v58 = vadd.f32 %v4946_v42, %v1485_v5  ;;  %v5603_v10 = vld [vmem:[#allocation40_spill] sm:$0xff] }
 0x192   :  { %v2309_v27 = vmul.f32 1.442695, %v2275_v37  ;;  %v2278_v48 = vsub.f32 0.0, %v2246_v12  ;;  %v2245_v56 = vmax.f32 %v2213_v35, 0.0  ;;  %v2216_v41 = vsub.f32 %v4805_v57, %v2184_v14  ;;  %v1996_v6 = vpop.f32.mrf.mxu1  ;;  %v5602_v57 = vld [vmem:[#allocation48_spill] sm:$0xff]  ;;  %v5052_v14 = vpop.f32.mrf.mxu0 }
 0x193   :  { %v2186_v24 = vmul.f32 2.0, %v2003_v9  ;;  %v2215_v31 = vsub.f32 %v4815_v40, %v2183_v38  ;;  %v1997_v11 = vadd.f32 %v1996_v6, %v1736_v60  ;;  %v1501_v34 = vadd.f32 %v5602_v57, %v4866_v53 }
 0x194   :  { %3340 = vpow2.f32 %v2309_v27  ;;  %v2315_v3 = vmul.f32 1.442695, %v2278_v48  ;;  %v2277_v55 = vsub.f32 0.0, %v2245_v56  ;;  %v2248_v23 = vmax.f32 %v2216_v41, 0.0  ;;  %v3217_v32 = vpop.f32.mrf.mxu1 }
 0x195   :  { %3342 = vpow2.f32 %v2311_v43  ;;  %v2247_v47 = vmax.f32 %v2215_v31, 0.0  ;;  %v2218_v42 = vsub.f32 %v4819_v19, %v2186_v24  ;;  %v2185_v5 = vmul.f32 2.0, %v1997_v11 }
 0x196   :  { %v2015_v33 = vadd.f32 %v3217_v32, %v4996_v63  ;;  %3344 = vpow2.f32 %v2315_v3  ;;  %v2313_v7 = vmul.f32 1.442695, %v2277_v55  ;;  %v2280_v40 = vsub.f32 0.0, %v2248_v23  ;;  %v2008_v60 = vpop.f32.mrf.mxu1  ;;  %v5067_v3 = vpop.f32.mrf.mxu0 }
 0x197   :  { %v2279_v39 = vsub.f32 0.0, %v2247_v47  ;;  %v2250_v59 = vmax.f32 %v2218_v42, 0.0  ;;  %v2217_v37 = vsub.f32 %v4829_v20, %v2185_v5  ;;  %v5049_v43 = vadd.f32 %v4981_v44, %v5603_v10  ;;  %v5604_v20 = vld [vmem:[#allocation36_spill] sm:$0xff] }
 0x198   :  { %v2188_v8 = vmul.f32 2.0, %v2015_v33  ;;  %3346 = vpow2.f32 %v2313_v7  ;;  %v2319_v19 = vmul.f32 1.442695, %v2280_v40  ;;  %v2009_v63 = vadd.f32 %v2008_v60, %v5004_v54  ;;  %v3220_v12 = vpop.f32.mrf.mxu1  ;;  %v5605_v54 = vld [vmem:[#allocation47_spill] sm:$0xff]  ;;  %v5606_v7 = vld [vmem:[#allocation49_spill] sm:$0xff] }
 0x199   :  { %v2317_v53 = vmul.f32 1.442695, %v2279_v39  ;;  %v2282_v35 = vsub.f32 0.0, %v2250_v59  ;;  %v2249_v22 = vmax.f32 %v2217_v37, 0.0  ;;  %v5056_v27 = vadd.f32 %v5000_v62, %v1501_v34 }
 0x19a   :  { %v2220_v18 = vsub.f32 %v4833_v50, %v2188_v8  ;;  %v1517_v38 = vadd.f32 %v5604_v20, %v4878_v21  ;;  %v2187_v44 = vmul.f32 2.0, %v2009_v63  ;;  %v2027_v9 = vadd.f32 %v3220_v12, %v5008_v30  ;;  %v2020_v48 = vpop.f32.mrf.mxu1  ;;  %v3337_v56 = vpop.eup %3336 }
 0x19b   :  { %v5063_v41 = vadd.f32 %v5022_v46, %v5605_v54  ;;  %3348 = vpow2.f32 %v2317_v53  ;;  %v2281_v6 = vsub.f32 0.0, %v2249_v22  ;;  %v2021_v11 = vadd.f32 %v2020_v48, %v5014_v36  ;;  %v1831_v8 = vpop.f32.mrf.mxu0 }
 0x19c   :  { %v2252_v24 = vmax.f32 %v2220_v18, 0.0  ;;  %v3339_v31 = vpop.eup %3338  ;;  %3350 = vpow2.f32 %v2319_v19  ;;  %v2190_v50 = vmul.f32 2.0, %v2027_v9  ;;  %v2219_v62 = vsub.f32 %v4848_v51, %v2187_v44  ;;  %v3223_v21 = vpop.f32.mrf.mxu1  ;;  %v5607_v18 = vld [vmem:[#allocation39_spill] sm:$0xff] }
 0x19d   :  { %v2323_v30 = vmul.f32 1.442695, %v2282_v35  ;;  %v2321_v55 = vmul.f32 1.442695, %v2281_v6  ;;  %v2039_v32 = vadd.f32 %v3223_v21, %v5018_v49  ;;  %3280 = vmatprep.mubr.f32.mxu0 %v3339_v31  ;;  %v5071_v46 = vadd.f32 %v5033_v13, %v1517_v38  ;;  %v3185_v9 = vpop.f32.mrf.mxu0 }
 0x19e   :  { %v2284_v23 = vsub.f32 0.0, %v2252_v24  ;;  %v2251_v47 = vmax.f32 %v2219_v62, 0.0  ;;  %v2222_v42 = vsub.f32 %v4859_v17, %v2190_v50  ;;  %v2189_v5 = vmul.f32 2.0, %v2021_v11  ;;  %v2032_v33 = vpop.f32.mrf.mxu1  ;;  %3281 = vmatmul.mubr.f32.vlgmr.msra.gmra.mxu0 %v3337_v56 }
 0x19f   :  { %3352 = vpow2.f32 %v2321_v55  ;;  %v2192_v36 = vmul.f32 2.0, %v2039_v32  ;;  %v2033_v57 = vadd.f32 %v2032_v33, %v5026_v0  ;;  %v1533_v40 = vadd.f32 %v5606_v7, %v4893_v1 }
 0x1a0   :  { %v2327_v51 = vmul.f32 1.442695, %v2284_v23  ;;  %v2283_v49 = vsub.f32 0.0, %v2251_v47  ;;  %v2254_v60 = vmax.f32 %v2222_v42, 0.0  ;;  %v2221_v13 = vsub.f32 %v4863_v45, %v2189_v5  ;;  %v3226_v39 = vpop.f32.mrf.mxu1  ;;  %v5093_v23 = vpop.f32.mrf.mxu0 }
 0x1a1   :  { %v3341_v34 = vpop.eup %3340  ;;  %3354 = vpow2.f32 %v2323_v30  ;;  %v2224_v17 = vsub.f32 %v4871_v2, %v2192_v36  ;;  %v2191_v37 = vmul.f32 2.0, %v2033_v57  ;;  %v2051_v10 = vadd.f32 %v3226_v39, %v5031_v52  ;;  %v5608_v30 = vld [vmem:[#allocation55_spill] sm:$0xff]  ;;  %v5609_v36 = vld [vmem:[#allocation57_spill] sm:$0xff] }
 0x1a2   :  { %v3343_v59 = vpop.eup %3342  ;;  %3283 = vmatprep.mubr.f32.mxu0 %v3341_v34  ;;  %3356 = vpow2.f32 %v2327_v51  ;;  %v2325_v0 = vmul.f32 1.442695, %v2283_v49  ;;  %v2286_v19 = vsub.f32 0.0, %v2254_v60  ;;  %v2253_v63 = vmax.f32 %v2221_v13, 0.0  ;;  %v2044_v12 = vpop.f32.mrf.mxu1  ;;  %v5610_v13 = vld [vmem:[#allocation41_spill] sm:$0xff] }
 0x1a3   :  { %3284 = vmatmul.mubr.f32.gmra.mxu0 %v3343_v59  ;;  %v3345_v1 = vpop.eup %3344  ;;  %v2256_v53 = vmax.f32 %v2224_v17, 0.0  ;;  %v2194_v35 = vmul.f32 2.0, %v2051_v10  ;;  %v2223_v45 = vsub.f32 %v4875_v28, %v2191_v37  ;;  %v2045_v22 = vadd.f32 %v2044_v12, %v5036_v58 }
 0x1a4   :  { %v1826_v2 = vadd.f32 %v5040_v29, %v5607_v18  ;;  %3358 = vpow2.f32 %v2325_v0  ;;  %v2331_v20 = vmul.f32 1.442695, %v2286_v19  ;;  %v2285_v52 = vsub.f32 0.0, %v2253_v63  ;;  %v3229_v38 = vpop.f32.mrf.mxu1 }
 0x1a5   :  { %v3347_v44 = vpop.eup %3346  ;;  %v2288_v48 = vsub.f32 0.0, %v2256_v53  ;;  %v2255_v56 = vmax.f32 %v2223_v45, 0.0  ;;  %v2226_v54 = vsub.f32 %v4882_v61, %v2194_v35  ;;  %v2193_v6 = vmul.f32 2.0, %v2045_v22  ;;  %v5613_v35 = vld [vmem:[#allocation19_spill] sm:$0xff] }
 0x1a6   :  { %v1820_v24 = vadd.f32 %v5052_v14, %v1533_v40  ;;  %v1549_v28 = vadd.f32 %v4746_v25, %v4906_v26  ;;  %v2329_v58 = vmul.f32 1.442695, %v2285_v52  ;;  %v2063_v31 = vadd.f32 %v3229_v38, %v5049_v43  ;;  %3286 = vmatprep.mubr.f32.mxu0 %v3347_v44  ;;  %v2056_v29 = vpop.f32.mrf.mxu1 }
 0x1a7   :  { %3360 = vpow2.f32 %v2331_v20  ;;  %v2287_v50 = vsub.f32 0.0, %v2255_v56  ;;  %v2258_v62 = vmax.f32 %v2226_v54, 0.0  ;;  %v2225_v11 = vsub.f32 %v4886_v15, %v2193_v6  ;;  %3287 = vmatmul.mubr.f32.gmra.mxu0 %v3345_v1 }
 0x1a8   :  { %v3349_v21 = vpop.eup %3348  ;;  %v1838_v61 = vadd.f32 %v5067_v3, %v5608_v30  ;;  %3362 = vpow2.f32 %v2329_v58  ;;  %v2196_v14 = vmul.f32 2.0, %v2063_v31  ;;  %v2057_v55 = vadd.f32 %v2056_v29, %v5056_v27  ;;  %v3232_v25 = vpop.f32.mrf.mxu1  ;;  %v5616_v58 = vld [vmem:[#allocation18_spill] sm:$0xff] }
 0x1a9   :  { %v3351_v26 = vpop.eup %3350  ;;  %v2335_v43 = vmul.f32 1.442695, %v2288_v48  ;;  %v2333_v32 = vmul.f32 1.442695, %v2287_v50  ;;  %v2290_v47 = vsub.f32 0.0, %v2258_v62  ;;  %v2257_v42 = vmax.f32 %v2225_v11, 0.0  ;;  %3289 = vmatprep.mubr.f32.mxu0 %v3349_v21 }
 0x1aa   :  { %v1832_v5 = vadd.f32 %v1831_v8, %v1549_v28  ;;  %v2228_v15 = vsub.f32 %v4890_v4, %v2196_v14  ;;  %v2195_v33 = vmul.f32 2.0, %v2057_v55  ;;  %v2075_v51 = vadd.f32 %v3232_v25, %v5063_v41  ;;  %v2068_v3 = vpop.f32.mrf.mxu1  ;;  %v3188_v4 = vpop.f32.mrf.mxu0  ;;  %v5614_v48 = vld [vmem:[#allocation8_spill] sm:$0xff]  ;;  %v5615_v28 = vld [vmem:[#allocation42_spill] sm:$0xff] }
 0x1ab   :  { %v1565_v57 = vadd.f32 %v5609_v36, %v4924_v16  ;;  %3364 = vpow2.f32 %v2333_v32  ;;  %v2289_v27 = vsub.f32 0.0, %v2257_v42  ;;  %v2069_v34 = vadd.f32 %v2068_v3, %v5071_v46  ;;  %3290 = vmatmul.mubr.f32.gmra.mxu0 %v3351_v26  ;;  %v5611_v16 = vld [vmem:[#allocation56_spill] sm:$0xff]  ;;  %v5617_v30 = vld [vmem:[#allocation34_spill] sm:$0xff]  ;;  %v5619_v36 = vld [vmem:[#allocation5_spill] sm:$0xff] }
 0x1ac   :  { %v3353_v7 = vpop.eup %3352  ;;  %v2339_v40 = vmul.f32 1.442695, %v2290_v47  ;;  %v2260_v49 = vmax.f32 %v2228_v15, 0.0  ;;  %v2198_v60 = vmul.f32 2.0, %v2075_v51  ;;  %v2227_v39 = vsub.f32 %v5610_v13, %v2195_v33  ;;  %v3235_v59 = vpop.f32.mrf.mxu1  ;;  %v5612_v46 = vld [vmem:[#allocation4_spill] sm:$0xff]  ;;  %v5618_v51 = vld [vmem:[#allocation29_spill] sm:$0xff] }
 0x1ad   :  { %3366 = vpow2.f32 %v2335_v43  ;;  %v2337_v8 = vmul.f32 1.442695, %v2289_v27  ;;  %v2197_v41 = vmul.f32 2.0, %v2069_v34  ;;  %v2087_v17 = vadd.f32 %v3235_v59, %v1826_v2  ;;  %3292 = vmatprep.mubr.f32.mxu0 %v3353_v7  ;;  %v1855_v44 = vpop.f32.mrf.mxu0 }
 0x1ae   :  { %v3355_v37 = vpop.eup %3354  ;;  %v1850_v10 = vadd.f32 %v3185_v9, %v5611_v16  ;;  %v2292_v0 = vsub.f32 0.0, %v2260_v49  ;;  %v2259_v19 = vmax.f32 %v2227_v39, 0.0  ;;  %v2230_v63 = vsub.f32 %v5612_v46, %v2198_v60  ;;  %v2080_v12 = vpop.f32.mrf.mxu1  ;;  %v5620_v60 = vld [vmem:[#allocation9_spill] sm:$0xff] }
 0x1af   :  { %v3357_v1 = vpop.eup %3356  ;;  %3368 = vpow2.f32 %v2337_v8  ;;  %v2200_v53 = vmul.f32 2.0, %v2087_v17  ;;  %v2229_v45 = vsub.f32 %v5613_v35, %v2197_v41  ;;  %v2081_v22 = vadd.f32 %v2080_v12, %v1820_v24  ;;  %3293 = vmatmul.mubr.f32.gmra.mxu0 %v3355_v37  ;;  %v3191_v47 = vpop.f32.mrf.mxu0  ;;  %v5622_v8 = vld [vmem:[#allocation12_spill] sm:$0xff] }
 0x1b0   :  { %3370 = vpow2.f32 %v2339_v40  ;;  %v2343_v18 = vmul.f32 1.442695, %v2292_v0  ;;  %v2291_v20 = vsub.f32 0.0, %v2259_v19  ;;  %v2262_v2 = vmax.f32 %v2230_v63, 0.0  ;;  %v3238_v52 = vpop.f32.mrf.mxu1  ;;  %v5623_v63 = vld [vmem:[#allocation15_spill] sm:$0xff] }
 0x1b1   :  { %v3359_v38 = vpop.eup %3358  ;;  %v2261_v9 = vmax.f32 %v2229_v45, 0.0  ;;  %v2232_v56 = vsub.f32 %v5614_v48, %v2200_v53  ;;  %v2199_v54 = vmul.f32 2.0, %v2081_v22  ;;  %v2099_v6 = vadd.f32 %v3238_v52, %v1838_v61  ;;  %v5624_v53 = vld [vmem:[#allocation45_spill] sm:$0xff] }
 0x1b2   :  { %v1581_v31 = vadd.f32 %v5616_v58, %v5615_v28  ;;  %3372 = vpow2.f32 %v2343_v18  ;;  %v2341_v29 = vmul.f32 1.442695, %v2291_v20  ;;  %v2294_v50 = vsub.f32 0.0, %v2262_v2  ;;  %3295 = vmatprep.mubr.f32.mxu0 %v3359_v38  ;;  %v2092_v24 = vpop.f32.mrf.mxu1  ;;  %v5625_v48 = vld [vmem:[#allocation33_spill] sm:$0xff] }
 0x1b3   :  { %v2293_v62 = vsub.f32 0.0, %v2261_v9  ;;  %v2264_v11 = vmax.f32 %v2232_v56, 0.0  ;;  %v2202_v21 = vmul.f32 2.0, %v2099_v6  ;;  %v2231_v14 = vsub.f32 %v5617_v30, %v2199_v54  ;;  %3296 = vmatmul.mubr.f32.gmra.mxu0 %v3357_v1  ;;  %v5626_v28 = vld [vmem:[#allocation53_spill] sm:$0xff] }
 0x1b4   :  { %v3361_v55 = vpop.eup %3360  ;;  %v1844_v25 = vadd.f32 %v5093_v23, %v1565_v57  ;;  %3374 = vpow2.f32 %v2341_v29  ;;  %v2347_v26 = vmul.f32 1.442695, %v2294_v50  ;;  %v2093_v61 = vadd.f32 %v2092_v24, %v1832_v5  ;;  %v3241_v43 = vpop.f32.mrf.mxu1  ;;  %v5621_v23 = vld [vmem:[#allocation2_spill] sm:$0xff] }
 0x1b5   :  { %v3363_v32 = vpop.eup %3362  ;;  %v2345_v42 = vmul.f32 1.442695, %v2293_v62  ;;  %v2296_v15 = vsub.f32 0.0, %v2264_v11  ;;  %v2263_v33 = vmax.f32 %v2231_v14, 0.0  ;;  %v2234_v3 = vsub.f32 %v5618_v51, %v2202_v21 }
 0x1b6   :  { %v1862_v27 = vadd.f32 %v3188_v4, %v5619_v36  ;;  %v1856_v34 = vadd.f32 %v1855_v44, %v1581_v31  ;;  %v2201_v7 = vmul.f32 2.0, %v2093_v61  ;;  %v2111_v40 = vadd.f32 %v3241_v43, %v1850_v10  ;;  %3298 = vmatprep.mubr.f32.mxu0 %v3363_v32  ;;  %v2104_v49 = vpop.f32.mrf.mxu1  ;;  %v1867_v4 = vpop.f32.mrf.mxu0 }
 0x1b7   :  { %v1597_v57 = vadd.f32 %v5621_v23, %v5620_v60  ;;  %3376 = vpow2.f32 %v2345_v42  ;;  %v2295_v5 = vsub.f32 0.0, %v2263_v33  ;;  %v2266_v13 = vmax.f32 %v2234_v3, 0.0  ;;  %3299 = vmatmul.mubr.f32.gmra.mxu0 %v3361_v55  ;;  %v5627_v55 = vld [vmem:[#allocation28_spill] sm:$0xff] }
 0x1b8   :  { %v3365_v39 = vpop.eup %3364  ;;  %3378 = vpow2.f32 %v2347_v26  ;;  %v2204_v59 = vmul.f32 2.0, %v2111_v40  ;;  %v2233_v41 = vsub.f32 %v5622_v8, %v2201_v7  ;;  %v2105_v17 = vadd.f32 %v2104_v49, %v1844_v25  ;;  %v3244_v37 = vpop.f32.mrf.mxu1 }
 0x1b9   :  { %v2351_v16 = vmul.f32 1.442695, %v2296_v15  ;;  %v2349_v0 = vmul.f32 1.442695, %v2295_v5  ;;  %v2298_v10 = vsub.f32 0.0, %v2266_v13  ;;  %v2123_v19 = vadd.f32 %v3244_v37, %v1862_v27  ;;  %3301 = vmatprep.mubr.f32.mxu0 %v3365_v39  ;;  %v5628_v15 = vld [vmem:[#allocation37_spill] sm:$0xff] }
 0x1ba   :  { %v3367_v46 = vpop.eup %3366  ;;  %v1874_v12 = vadd.f32 %v3191_v47, %v5623_v63  ;;  %v2265_v1 = vmax.f32 %v2233_v41, 0.0  ;;  %v2236_v35 = vsub.f32 %v5624_v53, %v2204_v59  ;;  %v2203_v45 = vmul.f32 2.0, %v2105_v17  ;;  %v2116_v22 = vpop.f32.mrf.mxu1 }
 0x1bb   :  { %3380 = vpow2.f32 %v2349_v0  ;;  %v2355_v18 = vmul.f32 1.442695, %v2298_v10  ;;  %v2206_v20 = vmul.f32 2.0, %v2123_v19  ;;  %v2117_v2 = vadd.f32 %v2116_v22, %v1856_v34  ;;  %3302 = vmatmul.mubr.f32.gmra.mxu0 %v3367_v46  ;;  %v5629_v34 = vld [vmem:[#allocation51_spill] sm:$0xff] }
 0x1bc   :  { %v3369_v52 = vpop.eup %3368  ;;  %v1868_v38 = vadd.f32 %v1867_v4, %v1597_v57  ;;  %v2297_v44 = vsub.f32 0.0, %v2265_v1  ;;  %v2268_v9 = vmax.f32 %v2236_v35, 0.0  ;;  %v2235_v56 = vsub.f32 %v5625_v48, %v2203_v45  ;;  %v3247_v54 = vpop.f32.mrf.mxu1 }
 0x1bd   :  { %v3371_v6 = vpop.eup %3370  ;;  %3382 = vpow2.f32 %v2351_v16  ;;  %v2238_v58 = vsub.f32 %v5626_v28, %v2206_v20  ;;  %v2205_v31 = vmul.f32 2.0, %v2117_v2  ;;  %v2135_v29 = vadd.f32 %v3247_v54, %v1874_v12  ;;  %3304 = vmatprep.mubr.f32.mxu0 %v3369_v52 }
 0x1be   :  { %3384 = vpow2.f32 %v2355_v18  ;;  %v2353_v50 = vmul.f32 1.442695, %v2297_v44  ;;  %v2300_v24 = vsub.f32 0.0, %v2268_v9  ;;  %v2267_v62 = vmax.f32 %v2235_v56, 0.0  ;;  %v2128_v11 = vpop.f32.mrf.mxu1 }
 0x1bf   :  { %v3373_v21 = vpop.eup %3372  ;;  %v2270_v30 = vmax.f32 %v2238_v58, 0.0  ;;  %v2208_v14 = vmul.f32 2.0, %v2135_v29  ;;  %v2237_v25 = vsub.f32 %v5627_v55, %v2205_v31  ;;  %v2129_v26 = vadd.f32 %v2128_v11, %v1868_v38  ;;  %3305 = vmatmul.mubr.f32.gmra.mxu0 %v3371_v6 }
 0x1c0   :  { %3386 = vpow2.f32 %v2353_v50  ;;  %v2359_v61 = vmul.f32 1.442695, %v2300_v24  ;;  %v2299_v43 = vsub.f32 0.0, %v2267_v62 }
 0x1c1   :  { %v3375_v32 = vpop.eup %3374  ;;  %v2302_v47 = vsub.f32 0.0, %v2270_v30  ;;  %v2269_v42 = vmax.f32 %v2237_v25, 0.0  ;;  %v2240_v33 = vsub.f32 %v5628_v15, %v2208_v14  ;;  %v2207_v51 = vmul.f32 2.0, %v2129_v26 }
 0x1c2   :  { %v2357_v3 = vmul.f32 1.442695, %v2299_v43  ;;  %3307 = vmatprep.mubr.f32.mxu0 %v3375_v32  ;;  %3388 = vpow2.f32 %v2359_v61 }
 0x1c3   :  { %v2301_v36 = vsub.f32 0.0, %v2269_v42  ;;  %v2272_v27 = vmax.f32 %v2240_v33, 0.0  ;;  %v2239_v7 = vsub.f32 %v5629_v34, %v2207_v51  ;;  %3308 = vmatmul.mubr.f32.gmra.mxu0 %v3373_v21  ;;  %v2363_v60 = vmul.f32 1.442695, %v2302_v47 }
 0x1c4   :  { %v3377_v40 = vpop.eup %3376  ;;  %3390 = vpow2.f32 %v2357_v3 }
 0x1c5   :  { %v3379_v49 = vpop.eup %3378  ;;  %v2361_v23 = vmul.f32 1.442695, %v2301_v36  ;;  %v2304_v57 = vsub.f32 0.0, %v2272_v27  ;;  %v2271_v5 = vmax.f32 %v2239_v7, 0.0  ;;  %3310 = vmatprep.mubr.f32.mxu0 %v3377_v40 }
 0x1c7   :  { %3392 = vpow2.f32 %v2361_v23  ;;  %v2303_v13 = vsub.f32 0.0, %v2271_v5  ;;  %3311 = vmatmul.mubr.f32.gmra.mxu0 %v3379_v49  ;;  %v2367_v59 = vmul.f32 1.442695, %v2304_v57 }
 0x1c8   :  { %v3381_v39 = vpop.eup %3380  ;;  %3394 = vpow2.f32 %v2363_v60 }
 0x1c9   :  { %v2365_v8 = vmul.f32 1.442695, %v2303_v13  ;;  %3313 = vmatprep.mubr.f32.mxu0 %v3381_v39 }
 0x1ca   :  { %v3383_v41 = vpop.eup %3382 }
 0x1cb   :  { %v3385_v17 = vpop.eup %3384  ;;  %3396 = vpow2.f32 %v2365_v8  ;;  %3314 = vmatmul.mubr.f32.gmra.mxu0 %v3383_v41 }
 0x1cc   :  { %3398 = vpow2.f32 %v2367_v59 }
 0x1cd   :  { %v3387_v37 = vpop.eup %3386 }
 0x1ce   :  { %3316 = vmatprep.mubr.f32.mxu0 %v3387_v37 }
 0x1cf   :  { %3317 = vmatmul.mubr.f32.gmra.mxu0 %v3385_v17  ;;  %v3389_v4 = vpop.eup %3388 }
 0x1d1   :  { %v3391_v16 = vpop.eup %3390 }
 0x1d2   :  { %3319 = vmatprep.mubr.f32.mxu0 %v3391_v16 }
 0x1d3   :  { %3320 = vmatmul.mubr.f32.gmra.mxu0 %v3389_v4 }
 0x1d4   :  { %v3393_v0 = vpop.eup %3392 }
 0x1d5   :  { %3322 = vmatprep.mubr.f32.mxu0 %v3393_v0  ;;  %v3395_v10 = vpop.eup %3394 }
 0x1d7   :  { %3323 = vmatmul.mubr.f32.gmra.mxu0 %v3395_v10 }
 0x1d8   :  { %v3397_v19 = vpop.eup %3396 }
 0x1d9   :  { %3325 = vmatprep.mubr.f32.mxu0 %v3397_v19  ;;  %v3399_v46 = vpop.eup %3398 }
 0x1db   :  { %3326 = vmatmul.mubr.f32.gmra.mxu0 %v3399_v46 }
 0x25e   :  { %v3282_v63 = vpop.f32.mrf.mxu0 }
 0x25f   :  { %2611 = vst [vmem:[%s5222_s5 + $0x8] sm:$0xff] %v3282_v63 }
 0x260   :  { %v2451_v12 = vpop.f32.mrf.mxu0 }
 0x261   :  { %2610 = vst [vmem:[%s5222_s5] sm:$0xff] %v2451_v12 }
 0x263   :  { %v3285_v1 = vpop.f32.mrf.mxu0 }
 0x264   :  { %2613 = vst [vmem:[%s5222_s5 + $0x18] sm:$0xff] %v3285_v1 }
 0x265   :  { %v2461_v53 = vpop.f32.mrf.mxu0 }
 0x266   :  { %2612 = vst [vmem:[%s5222_s5 + $0x10] sm:$0xff] %v2461_v53 }
 0x267   :  { %v3288_v35 = vpop.f32.mrf.mxu0 }
 0x268   :  { %2615 = vst [vmem:[%s5222_s5 + $0x28] sm:$0xff] %v3288_v35 }
 0x269   :  { %v2471_v45 = vpop.f32.mrf.mxu0 }
 0x26a   :  { %2614 = vst [vmem:[%s5222_s5 + $0x20] sm:$0xff] %v2471_v45 }
 0x26b   :  { %v3291_v22 = vpop.f32.mrf.mxu0 }
 0x26c   :  { %2617 = vst [vmem:[%s5222_s5 + $0x38] sm:$0xff] %v3291_v22 }
 0x26d   :  { %v2481_v18 = vpop.f32.mrf.mxu0 }
 0x26e   :  { %2616 = vst [vmem:[%s5222_s5 + $0x30] sm:$0xff] %v2481_v18 }
 0x26f   :  { %v3294_v20 = vpop.f32.mrf.mxu0 }
 0x270   :  { %2619 = vst [vmem:[%s5222_s5 + $0x48] sm:$0xff] %v3294_v20 }
 0x271   :  { %v2491_v2 = vpop.f32.mrf.mxu0 }
 0x272   :  { %2618 = vst [vmem:[%s5222_s5 + $0x40] sm:$0xff] %v2491_v2 }
 0x273   :  { %v3297_v52 = vpop.f32.mrf.mxu0 }
 0x274   :  { %2621 = vst [vmem:[%s5222_s5 + $0x58] sm:$0xff] %v3297_v52 }
 0x275   :  { %v2501_v38 = vpop.f32.mrf.mxu0 }
 0x276   :  { %2620 = vst [vmem:[%s5222_s5 + $0x50] sm:$0xff] %v2501_v38 }
 0x277   :  { %v3300_v44 = vpop.f32.mrf.mxu0 }
 0x278   :  { %2623 = vst [vmem:[%s5222_s5 + $0x68] sm:$0xff] %v3300_v44 }
 0x279   :  { %v2511_v9 = vpop.f32.mrf.mxu0 }
 0x27a   :  { %2622 = vst [vmem:[%s5222_s5 + $0x60] sm:$0xff] %v2511_v9 }
 0x27b   :  { %v3303_v48 = vpop.f32.mrf.mxu0 }
 0x27c   :  { %2625 = vst [vmem:[%s5222_s5 + $0x78] sm:$0xff] %v3303_v48 }
 0x27d   :  { %v2521_v56 = vpop.f32.mrf.mxu0 }
 0x27e   :  { %2624 = vst [vmem:[%s5222_s5 + $0x70] sm:$0xff] %v2521_v56 }
 0x27f   :  { %v3306_v54 = vpop.f32.mrf.mxu0 }
 0x280   :  { %2627 = vst [vmem:[%s5222_s5 + $0x88] sm:$0xff] %v3306_v54 }
 0x281   :  { %v2531_v6 = vpop.f32.mrf.mxu0 }
 0x282   :  { %2626 = vst [vmem:[%s5222_s5 + $0x80] sm:$0xff] %v2531_v6 }
 0x283   :  { %v3309_v28 = vpop.f32.mrf.mxu0 }
 0x284   :  { %2629 = vst [vmem:[%s5222_s5 + $0x98] sm:$0xff] %v3309_v28 }
 0x285   :  { %v2541_v58 = vpop.f32.mrf.mxu0 }
 0x286   :  { %2628 = vst [vmem:[%s5222_s5 + $0x90] sm:$0xff] %v2541_v58 }
 0x287   :  { %v3312_v31 = vpop.f32.mrf.mxu0 }
 0x288   :  { %2631 = vst [vmem:[%s5222_s5 + $0xa8] sm:$0xff] %v3312_v31 }
 0x289   :  { %v2551_v29 = vpop.f32.mrf.mxu0 }
 0x28a   :  { %2630 = vst [vmem:[%s5222_s5 + $0xa0] sm:$0xff] %v2551_v29 }
 0x28b   :  { %v3315_v50 = vpop.f32.mrf.mxu0 }
 0x28c   :  { %2633 = vst [vmem:[%s5222_s5 + $0xb8] sm:$0xff] %v3315_v50 }
 0x28d   :  { %v2561_v24 = vpop.f32.mrf.mxu0 }
 0x28e   :  { %2632 = vst [vmem:[%s5222_s5 + $0xb0] sm:$0xff] %v2561_v24 }
 0x28f   :  { %v3318_v62 = vpop.f32.mrf.mxu0 }
 0x290   :  { %2635 = vst [vmem:[%s5222_s5 + $0xc8] sm:$0xff] %v3318_v62 }
 0x291   :  { %v2571_v11 = vpop.f32.mrf.mxu0 }
 0x292   :  { %2634 = vst [vmem:[%s5222_s5 + $0xc0] sm:$0xff] %v2571_v11 }
 0x293   :  { %v3321_v21 = vpop.f32.mrf.mxu0 }
 0x294   :  { %2637 = vst [vmem:[%s5222_s5 + $0xd8] sm:$0xff] %v3321_v21 }
 0x295   :  { %v2581_v30 = vpop.f32.mrf.mxu0 }
 0x296   :  { %2636 = vst [vmem:[%s5222_s5 + $0xd0] sm:$0xff] %v2581_v30 }
 0x297   :  { %v3324_v14 = vpop.f32.mrf.mxu0 }
 0x298   :  { %2639 = vst [vmem:[%s5222_s5 + $0xe8] sm:$0xff] %v3324_v14 }
 0x299   :  { %v2591_v55 = vpop.f32.mrf.mxu0 }
 0x29a   :  { %2638 = vst [vmem:[%s5222_s5 + $0xe0] sm:$0xff] %v2591_v55 }
 0x29b   :  { %v3327_v25 = vpop.f32.mrf.mxu0 }
 0x29c   :  { %2641 = vst [vmem:[%s5222_s5 + $0xf8] sm:$0xff] %v3327_v25 }
 0x29d   :  { %v2601_v26 = vpop.f32.mrf.mxu0 }
 0x29e   :  { %2640 = vst [vmem:[%s5222_s5 + $0xf0] sm:$0xff] %v2601_v26 }

</bundles_post_ra>
